<compile_context>
chip_gen: v6e
topology: v6e:2x2x1
jax: 0.10.0
libtpu: 0.0.40
codegen_flags: <defaults>
</compile_context>

<pallas_src>
import functools

import jax
import jax.numpy as jnp
from jax.experimental import pallas as pl
from jax.experimental.pallas import tpu as pltpu

# Geometry implied by the module (fc = Linear(16*16*16, 10) forces 3x32x32 inputs).
H = W = 32
HW = H * W
CIN = 3
COUT = 16
KH = KW = 3
K_RAW = KH * KW * CIN          # 27 im2col taps
KP = 32                        # padded patch width: 27 taps + 1 bias column + 4 zeros
FOLD = 8                       # conv-output pixels folded per patch row
POOL_H = POOL_W = H // 2
P2 = POOL_H * POOL_W           # 256 pooled pixels / image
FC_IN = COUT * P2              # 4096
FC_OUT = 10


def cnn1_fused_kernel(p_ref, wcb_ref, wfc_ref, bfc_ref, o_ref, *, nb):
    """Fused conv(+bias) + ReLU + 2x2 maxpool + fc for `nb` images.

    p_ref:   (nb*128, 256) bf16  im2col rows; row = (n, h, w//8), col = 32*(w%8) + tap
    wcb_ref: (256, 128)    bf16  block-diag conv weight (8 copies of 32x16, bias row 27)
    wfc_ref: (4096, 10)    bf16  fc weight, rows ordered (ph, pw, c)
    bfc_ref: (1, 10)       f32   fc bias
    o_ref:   (nb, 10)      f32   logits
    """
    # ---- conv (+ folded bias) as ONE bf16 MXU matmul, then ReLU ----
    acc = jnp.dot(p_ref[...], wcb_ref[...], preferred_element_type=jnp.float32)
    acc = jnp.maximum(acc, 0.0)              # (nb*128, 128): rows (n, h, wg), lanes (j, c)

    # ---- 2x2 maxpool ----
    # H direction: adjacent h live 4 rows apart inside each 8-row (h-pair, wg) group.
    ah = jnp.max(acc.reshape(nb * POOL_H, 2, 4, FOLD * COUT), axis=1)   # (nb*16, 4, 128)
    # W direction: adjacent w are adjacent 16-lane blocks; fold wg into lanes so each
    # row becomes one lane-dense 256-wide pooled image row, lanes ordered (pw, c).
    pieces = []
    for wg in range(4):
        row = ah[:, wg, :]                                              # (nb*16, 128)
        for wp in range(4):
            lo = row[:, 32 * wp:32 * wp + COUT]
            hi = row[:, 32 * wp + COUT:32 * wp + 2 * COUT]
            pieces.append(jnp.maximum(lo, hi))                          # (nb*16, 16)
    pooled = jnp.concatenate(pieces, axis=-1)                           # (nb*16, 256)

    # ---- FC: flatten each image to one 4096-lane row, ONE MXU matmul ----
    pooled3 = pooled.reshape(nb, POOL_H, POOL_W * COUT)                 # (nb, 16, 256)
    flat = jnp.concatenate([pooled3[:, ph, :] for ph in range(POOL_H)], axis=-1)
    out = jnp.dot(flat.astype(jnp.bfloat16), wfc_ref[...],
                  preferred_element_type=jnp.float32)                   # (nb, 10)
    o_ref[...] = out + bfc_ref[...]


def _choose_blocking(batch):
    """Return (images per grid step, number of grid steps)."""
    if batch <= 1:
        return 1, 1
    if batch <= 16:
        nb = (batch + 1) // 2      # two steps -> both v7x TensorCores get work
        return nb, 2
    nb = 16                        # ~1 MiB bf16 patches/step; fits every chip's VMEM
    return nb, pl.cdiv(batch, nb)


def cnn1_forward(x_nchw, params):
    w_conv = params["w_conv"]   # (COUT, CIN, KH, KW)  PyTorch OIHW
    b_conv = params["b_conv"]   # (COUT,)
    w_fc = params["w_fc"]       # (FC_OUT, FC_IN)      PyTorch (out, in), NCHW-flatten cols
    b_fc = params["b_fc"]       # (FC_OUT,)
    B = x_nchw.shape[0]
    nb, G = _choose_blocking(B)
    B_pad = nb * G
    if B_pad != B:
        x_nchw = jnp.pad(x_nchw, ((0, B_pad - B), (0, 0), (0, 0), (0, 0)))

    # ---------------- plain-JAX glue (layout only, bf16) ----------------
    # im2col with the conv bias folded in as a ones column (tap 27); folding 8 output
    # pixels per row makes the conv a (.., 256) @ (256, 128) matmul in the kernel.
    x_nhwc = jnp.transpose(x_nchw, (0, 2, 3, 1)).astype(jnp.bfloat16)
    x_pad = jnp.pad(x_nhwc, ((0, 0), (1, 1), (1, 1), (0, 0)))
    taps = [x_pad[:, dy:dy + H, dx:dx + W, :] for dy in range(KH) for dx in range(KW)]
    ones = jnp.ones((B_pad, H, W, 1), jnp.bfloat16)
    patches = jnp.concatenate(taps + [ones], axis=-1)                   # (B_pad, 32, 32, 28)
    patches = jnp.pad(patches, ((0, 0), (0, 0), (0, 0), (0, KP - K_RAW - 1)))
    patches = patches.reshape(G, nb * (HW // FOLD), FOLD * KP)          # (G, nb*128, 256)

    # conv weight OIHW -> (dy, dx, cin)-major (27, 16); bias row; pad to (32, 16);
    # 8-way block-diagonal -> (256, 128).
    wc = jnp.transpose(w_conv, (2, 3, 1, 0)).reshape(K_RAW, COUT)
    wc = jnp.concatenate([wc, b_conv.reshape(1, COUT)], axis=0)
    wc = jnp.pad(wc, ((0, KP - K_RAW - 1), (0, 0)))                     # (32, 16)
    eye = jnp.eye(FOLD, dtype=wc.dtype)
    wcb = (eye[:, None, :, None] * wc[None, :, None, :]).reshape(FOLD * KP, FOLD * COUT)
    wcb = wcb.astype(jnp.bfloat16)                                      # (256, 128)

    # fc weight: PyTorch columns are (c, ph, pw)-ordered (x.view on NCHW); re-order once
    # to rows (ph, pw, c) so it matches the kernel's pooled / flatten lane order.
    wfc_k = jnp.transpose(w_fc.reshape(FC_OUT, COUT, POOL_H, POOL_W),
                          (2, 3, 1, 0)).reshape(FC_IN, FC_OUT).astype(jnp.bfloat16)
    bfc = b_fc.reshape(1, FC_OUT).astype(jnp.float32)

    out3 = pl.pallas_call(
        functools.partial(cnn1_fused_kernel, nb=nb),
        out_shape=jax.ShapeDtypeStruct((G, nb, FC_OUT), jnp.float32),
        grid=(G,),
        in_specs=[
            pl.BlockSpec((None, nb * (HW // FOLD), FOLD * KP), lambda g: (g, 0, 0)),
            pl.BlockSpec((FOLD * KP, FOLD * COUT), lambda g: (0, 0)),   # resident
            pl.BlockSpec((FC_IN, FC_OUT), lambda g: (0, 0)),            # resident
            pl.BlockSpec((1, FC_OUT), lambda g: (0, 0)),
        ],
        out_specs=pl.BlockSpec((None, nb, FC_OUT), lambda g: (g, 0, 0)),
        compiler_params=pltpu.CompilerParams(
            dimension_semantics=("parallel",),
            vmem_limit_bytes=32 * 1024 * 1024),
    )(patches, wcb, wfc_k, bfc)
    return out3.reshape(B_pad, FC_OUT)[:B]


if __name__ == "__main__":
    key = jax.random.PRNGKey(0)
    k1, k2, k3, k4, k5 = jax.random.split(key, 5)

    # batch=2, channels=3, spatial=32 (32 is forced by fc = Linear(16*16*16, 10))
    x = jax.random.normal(k1, (2, CIN, H, W), dtype=jnp.float32)

    params = {
        "w_conv": 0.1 * jax.random.normal(k2, (COUT, CIN, KH, KW), jnp.float32),
        "b_conv": 0.1 * jax.random.normal(k3, (COUT,), jnp.float32),
        "w_fc": 0.01 * jax.random.normal(k4, (FC_OUT, FC_IN), jnp.float32),
        "b_fc": 0.01 * jax.random.normal(k5, (FC_OUT,), jnp.float32),
    }

    out = jax.jit(cnn1_forward)(x, params)
    jax.block_until_ready(out)
    assert out.shape == (2, FC_OUT) and out.dtype == jnp.float32
    print("KERNEL_OK")
</pallas_src>

<mosaic_0001>
module attributes {stable_mosaic.version = 11 : i64} {
  func.func @cnn1_fused_kernel(%arg0: i32, %arg1: memref<1x128x256xbf16, #tpu.memory_space<vmem>>, %arg2: memref<256x128xbf16, #tpu.memory_space<vmem>>, %arg3: memref<4096x10xbf16, #tpu.memory_space<vmem>>, %arg4: memref<1x10xf32, #tpu.memory_space<vmem>>, %arg5: memref<1x1x10xf32, #tpu.memory_space<vmem>>) attributes {dimension_semantics = [#tpu.dimension_semantics<parallel>], iteration_bounds = array<i64: 2>, scalar_prefetch = 0 : i64, scratch_operands = 0 : i64, tpu.core_type = #tpu.core_type<tc>, window_params = [{transform_indices = @transform_0, window_bounds = array<i64: 1, 128, 256>}, {pipeline_mode = #tpu.pipeline_mode<synchronous>, transform_indices = @transform_1, window_bounds = array<i64: 256, 128>}, {pipeline_mode = #tpu.pipeline_mode<synchronous>, transform_indices = @transform_2, window_bounds = array<i64: 4096, 10>}, {pipeline_mode = #tpu.pipeline_mode<synchronous>, transform_indices = @transform_3, window_bounds = array<i64: 1, 10>}, {transform_indices = @transform_4, window_bounds = array<i64: 1, 1, 10>}]} {
    %c0 = arith.constant 0 : index
    %c0_0 = arith.constant 0 : index
    %c0_1 = arith.constant 0 : index
    %0 = vector.load %arg1[%c0, %c0_0, %c0_1] : memref<1x128x256xbf16, #tpu.memory_space<vmem>>, vector<1x128x256xbf16>
    %1 = vector.shape_cast %0 : vector<1x128x256xbf16> to vector<128x256xbf16>
    %c0_2 = arith.constant 0 : index
    %c0_3 = arith.constant 0 : index
    %2 = vector.load %arg2[%c0_2, %c0_3] : memref<256x128xbf16, #tpu.memory_space<vmem>>, vector<256x128xbf16>
    %cst = arith.constant dense<0.000000e+00> : vector<128x128xf32>
    %3 = tpu.matmul %1, %2, %cst {dimension_numbers = #tpu.dot_dimension_numbers<[1], [0], [0], [1], [0, 0, 1, 1], [], []>} : vector<128x256xbf16>, vector<256x128xbf16>, vector<128x128xf32> -> vector<128x128xf32>
    %cst_4 = arith.constant 0.000000e+00 : f32
    %4 = vector.broadcast %cst_4 : f32 to vector<128x128xf32>
    %5 = arith.maximumf %3, %4 : vector<128x128xf32>
    %6 = vector.shape_cast %5 : vector<128x128xf32> to vector<16x2x4x128xf32>
    %cst_5 = arith.constant dense<0xFF800000> : vector<16x4x128xf32>
    %7 = vector.multi_reduction <maximumf>, %6, %cst_5 [1] : vector<16x2x4x128xf32> to vector<16x4x128xf32>
    %8 = vector.extract_strided_slice %7 {offsets = [0, 0, 0], sizes = [16, 1, 128], strides = [1, 1, 1]} : vector<16x4x128xf32> to vector<16x1x128xf32>
    %9 = vector.shape_cast %8 : vector<16x1x128xf32> to vector<16x128xf32>
    %10 = vector.extract_strided_slice %9 {offsets = [0, 0], sizes = [16, 16], strides = [1, 1]} : vector<16x128xf32> to vector<16x16xf32>
    %11 = vector.extract_strided_slice %9 {offsets = [0, 16], sizes = [16, 16], strides = [1, 1]} : vector<16x128xf32> to vector<16x16xf32>
    %12 = arith.maximumf %10, %11 : vector<16x16xf32>
    %13 = vector.extract_strided_slice %9 {offsets = [0, 32], sizes = [16, 16], strides = [1, 1]} : vector<16x128xf32> to vector<16x16xf32>
    %14 = vector.extract_strided_slice %9 {offsets = [0, 48], sizes = [16, 16], strides = [1, 1]} : vector<16x128xf32> to vector<16x16xf32>
    %15 = arith.maximumf %13, %14 : vector<16x16xf32>
    %16 = vector.extract_strided_slice %9 {offsets = [0, 64], sizes = [16, 16], strides = [1, 1]} : vector<16x128xf32> to vector<16x16xf32>
    %17 = vector.extract_strided_slice %9 {offsets = [0, 80], sizes = [16, 16], strides = [1, 1]} : vector<16x128xf32> to vector<16x16xf32>
    %18 = arith.maximumf %16, %17 : vector<16x16xf32>
    %19 = vector.extract_strided_slice %9 {offsets = [0, 96], sizes = [16, 16], strides = [1, 1]} : vector<16x128xf32> to vector<16x16xf32>
    %20 = vector.extract_strided_slice %9 {offsets = [0, 112], sizes = [16, 16], strides = [1, 1]} : vector<16x128xf32> to vector<16x16xf32>
    %21 = arith.maximumf %19, %20 : vector<16x16xf32>
    %22 = vector.extract_strided_slice %7 {offsets = [0, 1, 0], sizes = [16, 1, 128], strides = [1, 1, 1]} : vector<16x4x128xf32> to vector<16x1x128xf32>
    %23 = vector.shape_cast %22 : vector<16x1x128xf32> to vector<16x128xf32>
    %24 = vector.extract_strided_slice %23 {offsets = [0, 0], sizes = [16, 16], strides = [1, 1]} : vector<16x128xf32> to vector<16x16xf32>
    %25 = vector.extract_strided_slice %23 {offsets = [0, 16], sizes = [16, 16], strides = [1, 1]} : vector<16x128xf32> to vector<16x16xf32>
    %26 = arith.maximumf %24, %25 : vector<16x16xf32>
    %27 = vector.extract_strided_slice %23 {offsets = [0, 32], sizes = [16, 16], strides = [1, 1]} : vector<16x128xf32> to vector<16x16xf32>
    %28 = vector.extract_strided_slice %23 {offsets = [0, 48], sizes = [16, 16], strides = [1, 1]} : vector<16x128xf32> to vector<16x16xf32>
    %29 = arith.maximumf %27, %28 : vector<16x16xf32>
    %30 = vector.extract_strided_slice %23 {offsets = [0, 64], sizes = [16, 16], strides = [1, 1]} : vector<16x128xf32> to vector<16x16xf32>
    %31 = vector.extract_strided_slice %23 {offsets = [0, 80], sizes = [16, 16], strides = [1, 1]} : vector<16x128xf32> to vector<16x16xf32>
    %32 = arith.maximumf %30, %31 : vector<16x16xf32>
    %33 = vector.extract_strided_slice %23 {offsets = [0, 96], sizes = [16, 16], strides = [1, 1]} : vector<16x128xf32> to vector<16x16xf32>
    %34 = vector.extract_strided_slice %23 {offsets = [0, 112], sizes = [16, 16], strides = [1, 1]} : vector<16x128xf32> to vector<16x16xf32>
    %35 = arith.maximumf %33, %34 : vector<16x16xf32>
    %36 = vector.extract_strided_slice %7 {offsets = [0, 2, 0], sizes = [16, 1, 128], strides = [1, 1, 1]} : vector<16x4x128xf32> to vector<16x1x128xf32>
    %37 = vector.shape_cast %36 : vector<16x1x128xf32> to vector<16x128xf32>
    %38 = vector.extract_strided_slice %37 {offsets = [0, 0], sizes = [16, 16], strides = [1, 1]} : vector<16x128xf32> to vector<16x16xf32>
    %39 = vector.extract_strided_slice %37 {offsets = [0, 16], sizes = [16, 16], strides = [1, 1]} : vector<16x128xf32> to vector<16x16xf32>
    %40 = arith.maximumf %38, %39 : vector<16x16xf32>
    %41 = vector.extract_strided_slice %37 {offsets = [0, 32], sizes = [16, 16], strides = [1, 1]} : vector<16x128xf32> to vector<16x16xf32>
    %42 = vector.extract_strided_slice %37 {offsets = [0, 48], sizes = [16, 16], strides = [1, 1]} : vector<16x128xf32> to vector<16x16xf32>
    %43 = arith.maximumf %41, %42 : vector<16x16xf32>
    %44 = vector.extract_strided_slice %37 {offsets = [0, 64], sizes = [16, 16], strides = [1, 1]} : vector<16x128xf32> to vector<16x16xf32>
    %45 = vector.extract_strided_slice %37 {offsets = [0, 80], sizes = [16, 16], strides = [1, 1]} : vector<16x128xf32> to vector<16x16xf32>
    %46 = arith.maximumf %44, %45 : vector<16x16xf32>
    %47 = vector.extract_strided_slice %37 {offsets = [0, 96], sizes = [16, 16], strides = [1, 1]} : vector<16x128xf32> to vector<16x16xf32>
    %48 = vector.extract_strided_slice %37 {offsets = [0, 112], sizes = [16, 16], strides = [1, 1]} : vector<16x128xf32> to vector<16x16xf32>
    %49 = arith.maximumf %47, %48 : vector<16x16xf32>
    %50 = vector.extract_strided_slice %7 {offsets = [0, 3, 0], sizes = [16, 1, 128], strides = [1, 1, 1]} : vector<16x4x128xf32> to vector<16x1x128xf32>
    %51 = vector.shape_cast %50 : vector<16x1x128xf32> to vector<16x128xf32>
    %52 = vector.extract_strided_slice %51 {offsets = [0, 0], sizes = [16, 16], strides = [1, 1]} : vector<16x128xf32> to vector<16x16xf32>
    %53 = vector.extract_strided_slice %51 {offsets = [0, 16], sizes = [16, 16], strides = [1, 1]} : vector<16x128xf32> to vector<16x16xf32>
    %54 = arith.maximumf %52, %53 : vector<16x16xf32>
    %55 = vector.extract_strided_slice %51 {offsets = [0, 32], sizes = [16, 16], strides = [1, 1]} : vector<16x128xf32> to vector<16x16xf32>
    %56 = vector.extract_strided_slice %51 {offsets = [0, 48], sizes = [16, 16], strides = [1, 1]} : vector<16x128xf32> to vector<16x16xf32>
    %57 = arith.maximumf %55, %56 : vector<16x16xf32>
    %58 = vector.extract_strided_slice %51 {offsets = [0, 64], sizes = [16, 16], strides = [1, 1]} : vector<16x128xf32> to vector<16x16xf32>
    %59 = vector.extract_strided_slice %51 {offsets = [0, 80], sizes = [16, 16], strides = [1, 1]} : vector<16x128xf32> to vector<16x16xf32>
    %60 = arith.maximumf %58, %59 : vector<16x16xf32>
    %61 = vector.extract_strided_slice %51 {offsets = [0, 96], sizes = [16, 16], strides = [1, 1]} : vector<16x128xf32> to vector<16x16xf32>
    %62 = vector.extract_strided_slice %51 {offsets = [0, 112], sizes = [16, 16], strides = [1, 1]} : vector<16x128xf32> to vector<16x16xf32>
    %63 = arith.maximumf %61, %62 : vector<16x16xf32>
    %64 = tpu.concatenate %12, %15, %18, %21, %26, %29, %32, %35, %40, %43, %46, %49, %54, %57, %60, %63 in 1 : vector<16x16xf32>, vector<16x16xf32>, vector<16x16xf32>, vector<16x16xf32>, vector<16x16xf32>, vector<16x16xf32>, vector<16x16xf32>, vector<16x16xf32>, vector<16x16xf32>, vector<16x16xf32>, vector<16x16xf32>, vector<16x16xf32>, vector<16x16xf32>, vector<16x16xf32>, vector<16x16xf32>, vector<16x16xf32> -> vector<16x256xf32>
    %65 = vector.shape_cast %64 : vector<16x256xf32> to vector<1x16x256xf32>
    %66 = vector.extract_strided_slice %65 {offsets = [0, 0, 0], sizes = [1, 1, 256], strides = [1, 1, 1]} : vector<1x16x256xf32> to vector<1x1x256xf32>
    %67 = vector.shape_cast %66 : vector<1x1x256xf32> to vector<1x256xf32>
    %68 = vector.extract_strided_slice %65 {offsets = [0, 1, 0], sizes = [1, 1, 256], strides = [1, 1, 1]} : vector<1x16x256xf32> to vector<1x1x256xf32>
    %69 = vector.shape_cast %68 : vector<1x1x256xf32> to vector<1x256xf32>
    %70 = vector.extract_strided_slice %65 {offsets = [0, 2, 0], sizes = [1, 1, 256], strides = [1, 1, 1]} : vector<1x16x256xf32> to vector<1x1x256xf32>
    %71 = vector.shape_cast %70 : vector<1x1x256xf32> to vector<1x256xf32>
    %72 = vector.extract_strided_slice %65 {offsets = [0, 3, 0], sizes = [1, 1, 256], strides = [1, 1, 1]} : vector<1x16x256xf32> to vector<1x1x256xf32>
    %73 = vector.shape_cast %72 : vector<1x1x256xf32> to vector<1x256xf32>
    %74 = vector.extract_strided_slice %65 {offsets = [0, 4, 0], sizes = [1, 1, 256], strides = [1, 1, 1]} : vector<1x16x256xf32> to vector<1x1x256xf32>
    %75 = vector.shape_cast %74 : vector<1x1x256xf32> to vector<1x256xf32>
    %76 = vector.extract_strided_slice %65 {offsets = [0, 5, 0], sizes = [1, 1, 256], strides = [1, 1, 1]} : vector<1x16x256xf32> to vector<1x1x256xf32>
    %77 = vector.shape_cast %76 : vector<1x1x256xf32> to vector<1x256xf32>
    %78 = vector.extract_strided_slice %65 {offsets = [0, 6, 0], sizes = [1, 1, 256], strides = [1, 1, 1]} : vector<1x16x256xf32> to vector<1x1x256xf32>
    %79 = vector.shape_cast %78 : vector<1x1x256xf32> to vector<1x256xf32>
    %80 = vector.extract_strided_slice %65 {offsets = [0, 7, 0], sizes = [1, 1, 256], strides = [1, 1, 1]} : vector<1x16x256xf32> to vector<1x1x256xf32>
    %81 = vector.shape_cast %80 : vector<1x1x256xf32> to vector<1x256xf32>
    %82 = vector.extract_strided_slice %65 {offsets = [0, 8, 0], sizes = [1, 1, 256], strides = [1, 1, 1]} : vector<1x16x256xf32> to vector<1x1x256xf32>
    %83 = vector.shape_cast %82 : vector<1x1x256xf32> to vector<1x256xf32>
    %84 = vector.extract_strided_slice %65 {offsets = [0, 9, 0], sizes = [1, 1, 256], strides = [1, 1, 1]} : vector<1x16x256xf32> to vector<1x1x256xf32>
    %85 = vector.shape_cast %84 : vector<1x1x256xf32> to vector<1x256xf32>
    %86 = vector.extract_strided_slice %65 {offsets = [0, 10, 0], sizes = [1, 1, 256], strides = [1, 1, 1]} : vector<1x16x256xf32> to vector<1x1x256xf32>
    %87 = vector.shape_cast %86 : vector<1x1x256xf32> to vector<1x256xf32>
    %88 = vector.extract_strided_slice %65 {offsets = [0, 11, 0], sizes = [1, 1, 256], strides = [1, 1, 1]} : vector<1x16x256xf32> to vector<1x1x256xf32>
    %89 = vector.shape_cast %88 : vector<1x1x256xf32> to vector<1x256xf32>
    %90 = vector.extract_strided_slice %65 {offsets = [0, 12, 0], sizes = [1, 1, 256], strides = [1, 1, 1]} : vector<1x16x256xf32> to vector<1x1x256xf32>
    %91 = vector.shape_cast %90 : vector<1x1x256xf32> to vector<1x256xf32>
    %92 = vector.extract_strided_slice %65 {offsets = [0, 13, 0], sizes = [1, 1, 256], strides = [1, 1, 1]} : vector<1x16x256xf32> to vector<1x1x256xf32>
    %93 = vector.shape_cast %92 : vector<1x1x256xf32> to vector<1x256xf32>
    %94 = vector.extract_strided_slice %65 {offsets = [0, 14, 0], sizes = [1, 1, 256], strides = [1, 1, 1]} : vector<1x16x256xf32> to vector<1x1x256xf32>
    %95 = vector.shape_cast %94 : vector<1x1x256xf32> to vector<1x256xf32>
    %96 = vector.extract_strided_slice %65 {offsets = [0, 15, 0], sizes = [1, 1, 256], strides = [1, 1, 1]} : vector<1x16x256xf32> to vector<1x1x256xf32>
    %97 = vector.shape_cast %96 : vector<1x1x256xf32> to vector<1x256xf32>
    %98 = tpu.concatenate %67, %69, %71, %73, %75, %77, %79, %81, %83, %85, %87, %89, %91, %93, %95, %97 in 1 : vector<1x256xf32>, vector<1x256xf32>, vector<1x256xf32>, vector<1x256xf32>, vector<1x256xf32>, vector<1x256xf32>, vector<1x256xf32>, vector<1x256xf32>, vector<1x256xf32>, vector<1x256xf32>, vector<1x256xf32>, vector<1x256xf32>, vector<1x256xf32>, vector<1x256xf32>, vector<1x256xf32>, vector<1x256xf32> -> vector<1x4096xf32>
    %99 = arith.truncf %98 : vector<1x4096xf32> to vector<1x4096xbf16>
    %c0_6 = arith.constant 0 : index
    %c0_7 = arith.constant 0 : index
    %100 = vector.load %arg3[%c0_6, %c0_7] : memref<4096x10xbf16, #tpu.memory_space<vmem>>, vector<4096x10xbf16>
    %cst_8 = arith.constant dense<0.000000e+00> : vector<1x10xf32>
    %101 = tpu.matmul %99, %100, %cst_8 {dimension_numbers = #tpu.dot_dimension_numbers<[1], [0], [0], [1], [0, 0, 1, 1], [], []>} : vector<1x4096xbf16>, vector<4096x10xbf16>, vector<1x10xf32> -> vector<1x10xf32>
    %c0_9 = arith.constant 0 : index
    %c0_10 = arith.constant 0 : index
    %102 = vector.load %arg4[%c0_9, %c0_10] : memref<1x10xf32, #tpu.memory_space<vmem>>, vector<1x10xf32>
    %103 = arith.addf %101, %102 : vector<1x10xf32>
    %c0_11 = arith.constant 0 : index
    %c0_12 = arith.constant 0 : index
    %c0_13 = arith.constant 0 : index
    %104 = vector.load %arg5[%c0_11, %c0_12, %c0_13] : memref<1x1x10xf32, #tpu.memory_space<vmem>>, vector<1x1x10xf32>
    %105 = vector.shape_cast %104 : vector<1x1x10xf32> to vector<1x10xf32>
    %106 = vector.shape_cast %103 : vector<1x10xf32> to vector<1x1x10xf32>
    tpu.vector_store %arg5[%c0_11, %c0_12, %c0_13], %106 {strides = array<i32>} : memref<1x1x10xf32, #tpu.memory_space<vmem>>, vector<1x1x10xf32>,
    return
  }
  func.func @transform_0(%arg0: i32) -> (i32, i32, i32) {
    %c0_i32 = arith.constant 0 : i32
    %c0_i32_0 = arith.constant 0 : i32
    %c0_i32_1 = arith.constant 0 : i32
    return %arg0, %c0_i32, %c0_i32_0 : i32, i32, i32
  }
  func.func @transform_1(%arg0: i32) -> (i32, i32) {
    %c0_i32 = arith.constant 0 : i32
    %c0_i32_0 = arith.constant 0 : i32
    %c0_i32_1 = arith.constant 0 : i32
    return %c0_i32, %c0_i32_0 : i32, i32
  }
  func.func @transform_2(%arg0: i32) -> (i32, i32) {
    %c0_i32 = arith.constant 0 : i32
    %c0_i32_0 = arith.constant 0 : i32
    %c0_i32_1 = arith.constant 0 : i32
    return %c0_i32, %c0_i32_0 : i32, i32
  }
  func.func @transform_3(%arg0: i32) -> (i32, i32) {
    %c0_i32 = arith.constant 0 : i32
    %c0_i32_0 = arith.constant 0 : i32
    %c0_i32_1 = arith.constant 0 : i32
    return %c0_i32, %c0_i32_0 : i32, i32
  }
  func.func @transform_4(%arg0: i32) -> (i32, i32, i32) {
    %c0_i32 = arith.constant 0 : i32
    %c0_i32_0 = arith.constant 0 : i32
    %c0_i32_1 = arith.constant 0 : i32
    return %arg0, %c0_i32, %c0_i32_0 : i32, i32, i32
  }
}

</mosaic_0001>

<bundles_post_ra>
// kernel: cnn1_forward.1
= control target key start
LH: loop header
LB: loop body
LE: loop exit
PB: predicated region body
PF: predicated region fallthrough
CT: control target
= control target key end

     0   :  { %9 = vsyncpa [#allocation3], 0  ;;  %s6613_s0 = inlined_call_operand.vmem [shape: bf16[2,128,256], index: 0, kind: input, shape index: {}]   ;;  %s6614_s1 = inlined_call_operand.vmem [shape: bf16[256,128], index: 1, kind: input, shape index: {}]   ;;  %s6615_s2 = inlined_call_operand.vmem [shape: bf16[4096,10], index: 2, kind: input, shape index: {}]   ;;  %s6616_s3 = inlined_call_operand.vmem [shape: f32[1,10], index: 3, kind: input, shape index: {}]   ;;  %s6617_s4 = inlined_call_operand.hbm [shape: f32[2,1,10], index: 4, kind: output, shape index: {}]  }
   0x1   :  { %11 = vsyncpa [#allocation3 + $0x1], 0  ;;  %s5280_s15 = smov 0   ;;  %s5282_s16 = smov 0  }
   0x2   :  { %s5284_s17 = smov 0   ;;  %s5286_s18 = smov 0  }
   0x3 LB: > { %s5301_s19 = sadd.s32 4294967295, %s5245_s18   ;;  %s4019_s20 = sadd.s32 4294967294, %s5245_s18   ;;  %s5245_s18 = sphi %s5286_s18, %s6623_s18   ;;  %s5241_s17 = sphi %s5284_s17, %s6622_s17   ;;  %s5237_s16 = sphi %s5282_s16, %s6621_s16   ;;  %s5233_s15 = sphi %s5280_s15, %s6620_s15  }
   0x4   : > { %s5305_s21 = sadd.s32 1, %s5245_s18   ;;  %s113_s22 = sadd.s32 1, %s5241_s17 }
   0x5   : > { %s110_s23 = ssub.s32 %s5245_s18, %s5305_s21  ;;  %p123_p0 = scmp.ne.s32.totalorder %s5241_s17, %s5237_s16 }
   0x6   : > { %p111_p1 = scmp.eq.s32.totalorder %s110_s23, 0  ;;  %p124_p2 = scmp.eq.s32.totalorder %s5301_s19, 1 }
   0x7   : > { %p129_p3 = scmp.ne.s32.totalorder %s5237_s16, %s5233_s15  ;;  %p130_p4 = scmp.eq.s32.totalorder %s4019_s20, 1 }
   0x8   : > { %s5316_s24 = scalar_select %p111_p1, %s5241_s17, %s113_s22  }
   0x9   : > { %p5318_p5 = por %p124_p2, %p123_p0  ;;  %p5322_p6 = por %p130_p4, %p129_p3 }
   0xa   : > { %p4022_p7 = scmp.ge.s32.totalorder %s5245_s18, 1  ;;  %p165_p8 = scmp.lt.s32.totalorder %s5245_s18, 3 }
   0xc   : > { %p166_p9 = pnand %p4022_p7, %p165_p8 }
   0xd   : > { %p190_p10 = scmp.lt.s32.totalorder (!%p166_p9), %s5301_s19, 1  ;;  %s5247_s30 = smov (!%p166_p9), 112  }
   0xe   : > { %169 = sbr.rel (%p166_p9) target bundleno = 1018 (0x3fa), region = 36  ;;  %s5249_s29 = smov (!%p166_p9), 64  }
   0xf   : > { %s5250_s5 = smov (!%p166_p9), 80   ;;  %s5251_s10 = smov (!%p166_p9), 32  }
  0x10   : > { %s5252_s11 = smov (!%p166_p9), 48   ;;  %s5253_s20 = smov (!%p166_p9), 16  }
  0x11   : > { %s188_s9 = sand.u32 (!%p166_p9), 1, %s5237_s16   ;;  %s4313_s12 = sshll.u32 (!%p166_p9), %s5301_s19, 4 }
  0x12   : > { %s189_s14 = scalar_lea.vmem (!%p166_p9), [#allocation2], %s188_s9  ;;  %s3952_s23 = scalar_lea.sflag (!%p166_p9), [#allocation3], %s188_s9 }
  0x13   : > { %v4889_v0 = vld [vmem:[%s6614_s1 + $0x78] sm:$0xff]   ;;  %v4891_v2 = vld [vmem:[%s6614_s1 + $0x70] sm:$0xff]   ;;  %v4893_v4 = vld [vmem:[%s6614_s1 + $0x68] sm:$0xff]   ;;  %s191_s13 = scalar_select %p190_p10, %s5301_s19, 1  ;;  %vm581_vm0 = vcmask 1043456   ;;  %vm790_vm1 = vcmask 1041409  }
  0x14   : > { %v4890_v1 = vld [vmem:[%s6614_s1 + $0x38] sm:$0xff]   ;;  %4317 = vmatprep.subr.bf16.mxu0 %v4889_v0  ;;  %v4892_v3 = vld [vmem:[%s6614_s1 + $0x30] sm:$0xff]   ;;  %v4894_v5 = vld [vmem:[%s6614_s1 + $0x28] sm:$0xff]   ;;  %vm792_vm2 = vcmask 1042434   ;;  %vm794_vm3 = vcmask 1043459   ;;  %vm796_vm4 = vcmask 1044484  }
  0x15   : > { %4318 = vmatpush3.bf16.msra.mxu0 %v4890_v1  ;;  %v4895_v6 = vld [vmem:[%s6614_s1 + $0x60] sm:$0xff]   ;;  %s4316_s27 = sshll.u32 %s191_s13, 7  ;;  %v4897_v8 = vld [vmem:[%s6614_s1 + $0x58] sm:$0xff]   ;;  %v4899_v10 = vld [vmem:[%s6614_s1 + $0x50] sm:$0xff]   ;;  %vm798_vm5 = vcmask 1045509   ;;  %vm800_vm6 = vcmask 1046534  }
  0x16   : > { %4319 = vmatprep.subr.bf16.mxu0 %v4891_v2  ;;  %v4896_v7 = vld [vmem:[%s6614_s1 + $0x20] sm:$0xff]   ;;  %s5360_s6 = scalar_lea.vmem %s6613_s0, %s4316_s27  ;;  %v4898_v9 = vld [vmem:[%s6614_s1 + $0x18] sm:$0xff]   ;;  %v4900_v12 = vld [vmem:[%s6614_s1 + $0x10] sm:$0xff]   ;;  %vm802_vm7 = vcmask 1047559   ;;  %s5248_s13 = smov 96   ;;  %vm1133_vm8 = vcmask 130048  }
  0x17   : > { %v4907_v11 = vld [vmem:[%s5360_s6 + $0x4] ss:$8 sps:$4 sm:$0xff]   ;;  %v4905_v17 = vld [vmem:[%s5360_s6] ss:$8 sps:$4 sm:$0xff]   ;;  %v4908_v18 = vld [vmem:[%s5360_s6 + $0x14] ss:$8 sps:$4 sm:$0xff]  }
  0x18   : > { %452 = vmatprep.mubr.bf16.mxu0 %v4907_v11  ;;  %v4901_v13 = vld [vmem:[%s6614_s1 + $0x48] sm:$0xff]   ;;  %v4903_v15 = vld [vmem:[%s6614_s1 + $0x40] sm:$0xff]   ;;  %v4910_v19 = vld [vmem:[%s5360_s6 + $0x10] ss:$8 sps:$4 sm:$0xff]   ;;  %vm1136_vm9 = vcmask 261120   ;;  %vm1139_vm10 = vcmask 392192  }
  0x19   : > { %4320 = vmatpush3.bf16.msra.mxu0 %v4892_v3  ;;  %v4902_v14 = vld [vmem:[%s6614_s1 + $0x8] sm:$0xff]   ;;  %v4904_v16 = vld [vmem:[%s6614_s1] sm:$0xff]   ;;  %v4914_v22 = vld [vmem:[%s5360_s6 + $0x34] ss:$8 sps:$4 sm:$0xff]   ;;  %vm1142_vm11 = vcmask 523264   ;;  %vm1145_vm12 = vcmask 654336  }
  0x1a   : > { %4321 = vmatprep.subr.bf16.mxu0 %v4893_v4  ;;  %v4911_v20 = vld [vmem:[%s5360_s6 + $0x24] ss:$8 sps:$4 sm:$0xff]   ;;  %v4913_v21 = vld [vmem:[%s5360_s6 + $0x20] ss:$8 sps:$4 sm:$0xff]   ;;  %v4916_v23 = vld [vmem:[%s5360_s6 + $0x30] ss:$8 sps:$4 sm:$0xff]  }
  0x1b   : > { %v4917_v24 = vld [vmem:[%s5360_s6 + $0x44] ss:$8 sps:$4 sm:$0xff]   ;;  %v4919_v25 = vld [vmem:[%s5360_s6 + $0x40] ss:$8 sps:$4 sm:$0xff]   ;;  %v4920_v26 = vld [vmem:[%s5360_s6 + $0x54] ss:$8 sps:$4 sm:$0xff]  }
  0x1c   : > { %v4922_v27 = vld [vmem:[%s5360_s6 + $0x50] ss:$8 sps:$4 sm:$0xff]   ;;  %v4923_v28 = vld [vmem:[%s5360_s6 + $0x64] ss:$8 sps:$4 sm:$0xff]   ;;  %v4925_v29 = vld [vmem:[%s5360_s6 + $0x60] ss:$8 sps:$4 sm:$0xff]  }
  0x1d   : > { %4322 = vmatpush3.bf16.msra.mxu0 %v4894_v5  ;;  %v4926_v30 = vld [vmem:[%s5360_s6 + $0x74] ss:$8 sps:$4 sm:$0xff]   ;;  %v4928_v31 = vld [vmem:[%s5360_s6 + $0x70] ss:$8 sps:$4 sm:$0xff]   ;;  %vm1148_vm13 = vcmask 785408   ;;  %vm1151_vm14 = vcmask 916480  }
  0x1e   : > { %4323 = vmatprep.subr.bf16.mxu0 %v4895_v6  ;;  %vm3949_vm15 = vcmask 73728   ;;  %s5254_s19 = smov [#allocation2]  }
  0x1f   : > { %s5189_s28 = sshll.u32 %s5254_s19, 4  ;;  %s5190_s28 = int_to_ptr.vmem [resolvable:$false] %s5189_s28 }
  0x21   : > { %4324 = vmatpush3.bf16.msra.mxu0 %v4896_v7 }
  0x22   : > { %4325 = vmatprep.subr.bf16.mxu0 %v4897_v8 }
  0x25   : > { %4326 = vmatpush3.bf16.msra.mxu0 %v4898_v9 }
  0x26   : > { %4327 = vmatprep.subr.bf16.mxu0 %v4899_v10 }
  0x29   : > { %4328 = vmatpush3.bf16.msra.mxu0 %v4900_v12 }
  0x2a   : > { %4329 = vmatprep.subr.bf16.mxu0 %v4901_v13 }
  0x2d   : > { %4330 = vmatpush3.bf16.msra.mxu0 %v4902_v14 }
  0x2e   : > { %4331 = vmatprep.subr.bf16.mxu0 %v4903_v15 }
  0x31   : > { %4332 = vmatpush3.bf16.msra.mxu0 %v4904_v16 }
  0x34   : > { %453 = vmatmul.mubr.bf16.vlgmr.msra.gmra.mxu0 %v4905_v17 }
  0x35   : > { %460 = vmatprep.mubr.bf16.mxu0 %v4908_v18 }
  0x3c   : > { %461 = vmatmul.mubr.bf16.gmra.mxu0 %v4910_v19 }
  0x3d   : > { %468 = vmatprep.mubr.bf16.mxu0 %v4911_v20 }
  0x44   : > { %469 = vmatmul.mubr.bf16.gmra.mxu0 %v4913_v21 }
  0x45   : > { %476 = vmatprep.mubr.bf16.mxu0 %v4914_v22 }
  0x4c   : > { %477 = vmatmul.mubr.bf16.gmra.mxu0 %v4916_v23 }
  0x4d   : > { %484 = vmatprep.mubr.bf16.mxu0 %v4917_v24 }
  0x54   : > { %485 = vmatmul.mubr.bf16.gmra.mxu0 %v4919_v25 }
  0x55   : > { %492 = vmatprep.mubr.bf16.mxu0 %v4920_v26 }
  0x5c   : > { %493 = vmatmul.mubr.bf16.gmra.mxu0 %v4922_v27 }
  0x5d   : > { %500 = vmatprep.mubr.bf16.mxu0 %v4923_v28 }
  0x64   : > { %501 = vmatmul.mubr.bf16.gmra.mxu0 %v4925_v29 }
  0x65   : > { %508 = vmatprep.mubr.bf16.mxu0 %v4926_v30 }
  0x6c   : > { %509 = vmatmul.mubr.bf16.gmra.mxu0 %v4928_v31 }
  0xf4   : > { %v4333_v32 = vpop.f32.mrf.mxu0 }
  0xf6   : > { %v4334_v33 = vpop.f32.mrf.mxu0 }
  0xf7   : > { %v4335_v34 = vadd.f32 %v4334_v33, %v4333_v32 }
  0xf8   : > { %v4336_v35 = vpop.f32.mrf.mxu0 }
  0xf9   : > { %v517_v36 = vmax.f32 %v4335_v34, 0.0 }
  0xfa   : > { %v4337_v37 = vpop.f32.mrf.mxu0 }
  0xfb   : > { %v549_v38 = vcombine.high %v517_v36, %v517_v36  ;;  %v4338_v39 = vadd.f32 %v4337_v37, %v4336_v35  ;;  %v582_v47 = vsel %vm581_vm0, %v517_v36, -inf  ;;  %v4929_v36 = vld [vmem:[%s6615_s2 + $0x78] sm:$0xff]  }
  0xfc   : > { %v4339_v40 = vpop.f32.mrf.mxu0  ;;  %v4930_v37 = vld [vmem:[%s6615_s2 + $0x38] sm:$0xff]   ;;  %4381 = vmatprep.subr.bf16.mxu1 %v4929_v36 }
  0xfd   : > { %v518_v41 = vmax.f32 %v4338_v39, 0.0  ;;  %v583_v45 = vsel %vm581_vm0, %v549_v38, -inf  ;;  %v4931_v38 = vld [vmem:[%s6615_s2 + $0x178] sm:$0xff]   ;;  %4382 = vmatpush3.bf16.msra.mxu1 %v4930_v37 }
  0xfe   : > { %v4340_v42 = vpop.f32.mrf.mxu0  ;;  %v5403_v52 = vmax.f32 %v582_v47, %v583_v45  ;;  %v4932_v39 = vld [vmem:[%s6615_s2 + $0x138] sm:$0xff]   ;;  %4425 = vmatprep.subr.bf16.mxu0 %v4931_v38  ;;  %v4939_v45 = vld [vmem:[%s6615_s2 + $0x168] sm:$0xff]  }
  0xff   : > { %v550_v43 = vcombine.high %v518_v41, %v518_v41  ;;  %v4341_v44 = vadd.f32 %v4340_v42, %v4339_v40  ;;  %v585_v48 = vsel %vm581_vm0, %v518_v41, -inf  ;;  %v4933_v40 = vld [vmem:[%s6615_s2 + $0x70] sm:$0xff]   ;;  %4426 = vmatpush3.bf16.msra.mxu0 %v4932_v39  ;;  %v4940_v47 = vld [vmem:[%s6615_s2 + $0x128] sm:$0xff]  }
 0x100   : > { %v4342_v46 = vpop.f32.mrf.mxu0  ;;  %v4935_v41 = vld [vmem:[%s6615_s2 + $0x170] sm:$0xff]   ;;  %4383 = vmatprep.subr.bf16.mxu1 %v4933_v40 }
 0x101   : > { %v519_v49 = vmax.f32 %v4341_v44, 0.0  ;;  %v586_v50 = vsel %vm581_vm0, %v550_v43, -inf  ;;  %v4934_v42 = vld [vmem:[%s6615_s2 + $0x30] sm:$0xff]   ;;  %4427 = vmatprep.subr.bf16.mxu0 %v4935_v41  ;;  %v4937_v44 = vld [vmem:[%s6615_s2 + $0x68] sm:$0xff]  }
 0x102   : > { %v4343_v51 = vpop.f32.mrf.mxu0  ;;  %v5405_v53 = vmax.f32 %v585_v48, %v586_v50  ;;  %v4936_v43 = vld [vmem:[%s6615_s2 + $0x130] sm:$0xff]   ;;  %4384 = vmatpush3.bf16.msra.mxu1 %v4934_v42  ;;  %v4941_v48 = vld [vmem:[%s6615_s2 + $0x60] sm:$0xff]  }
 0x103   : > { %v551_v54 = vcombine.high %v519_v49, %v519_v49  ;;  %v4344_v55 = vadd.f32 %v4343_v51, %v4342_v46  ;;  %v588_v0 = vsel %vm581_vm0, %v519_v49, -inf  ;;  %4428 = vmatpush3.bf16.msra.mxu0 %v4936_v43  ;;  %v4938_v46 = vld [vmem:[%s6615_s2 + $0x28] sm:$0xff]   ;;  %4385 = vmatprep.subr.bf16.mxu1 %v4937_v44  ;;  %v4943_v49 = vld [vmem:[%s6615_s2 + $0x160] sm:$0xff]  }
 0x104   : > { %v4345_v56 = vpop.f32.mrf.mxu0  ;;  %v4779_v57 = vpack.i.bf16 %v5405_v53, %v5403_v52  ;;  %4429 = vmatprep.subr.bf16.mxu0 %v4939_v45  ;;  %v4942_v50 = vld [vmem:[%s6615_s2 + $0x20] sm:$0xff]  }
 0x105   : > { %v520_v58 = vmax.f32 %v4344_v55, 0.0  ;;  %v589_v60 = vsel %vm581_vm0, %v551_v54, -inf }
 0x106   : > { %v4346_v59 = vpop.f32.mrf.mxu0  ;;  %4780 = vrot.lane.b32.xlu0 %v4779_v57, %s5247_s30  ;;  %v5414_v4 = vmax.f32 %v588_v0, %v589_v60  ;;  %4386 = vmatpush3.bf16.msra.mxu1 %v4938_v46 }
 0x107   : > { %v552_v61 = vcombine.high %v520_v58, %v520_v58  ;;  %v4347_v62 = vadd.f32 %v4346_v59, %v4345_v56  ;;  %v591_v1 = vsel %vm581_vm0, %v520_v58, -inf  ;;  %4430 = vmatpush3.bf16.msra.mxu0 %v4940_v47  ;;  %4387 = vmatprep.subr.bf16.mxu1 %v4941_v48 }
 0x108   : > { %v4348_v63 = vpop.f32.mrf.mxu0  ;;  %4431 = vmatprep.subr.bf16.mxu0 %v4943_v49 }
 0x109   : > { %v592_v2 = vsel %vm581_vm0, %v552_v61, -inf  ;;  %v521_v3 = vmax.f32 %v4347_v62, 0.0  ;;  %v726_v61 = vlaneseq }
 0x10a   : > { %v5416_v5 = vmax.f32 %v591_v1, %v592_v2  ;;  %v4349_v6 = vpop.f32.mrf.mxu0  ;;  %4388 = vmatpush3.bf16.msra.mxu1 %v4942_v50 }
 0x10b   : > { %v553_v7 = vcombine.high %v521_v3, %v521_v3  ;;  %v4350_v8 = vadd.f32 %v4349_v6, %v4348_v63  ;;  %v594_v17 = vsel %vm581_vm0, %v521_v3, -inf  ;;  %v727_v0 = vshrl.u32 %v726_v61, 7 }
 0x10c   : > { %v4351_v9 = vpop.f32.mrf.mxu0  ;;  %v4784_v10 = vpack.i.bf16 %v5416_v5, %v5414_v4 }
 0x10d   : > { %v522_v11 = vmax.f32 %v4350_v8, 0.0  ;;  %v595_v15 = vsel %vm581_vm0, %v553_v7, -inf  ;;  %v5496_v7 = vsub.s32 0, %v727_v0 }
 0x10e   : > { %v4352_v12 = vpop.f32.mrf.mxu0  ;;  %4785 = vrot.lane.b32.xlu0 %v4784_v10, %s5247_s30  ;;  %v5425_v22 = vmax.f32 %v594_v17, %v595_v15 }
 0x10f   : > { %v554_v13 = vcombine.high %v522_v11, %v522_v11  ;;  %v4353_v14 = vadd.f32 %v4352_v12, %v4351_v9  ;;  %v597_v18 = vsel %vm581_vm0, %v522_v11, -inf  ;;  %v5500_v11 = vsub.s32 1, %v727_v0 }
 0x110   : > { %v4354_v16 = vpop.f32.mrf.mxu0 }
 0x111   : > { %v523_v19 = vmax.f32 %v4353_v14, 0.0  ;;  %v598_v20 = vsel %vm581_vm0, %v554_v13, -inf  ;;  %v5504_v14 = vsub.s32 2, %v727_v0 }
 0x112   : > { %v4355_v21 = vpop.f32.mrf.mxu0  ;;  %v5427_v23 = vmax.f32 %v597_v18, %v598_v20 }
 0x113   : > { %v555_v24 = vcombine.high %v523_v19, %v523_v19  ;;  %v4356_v25 = vadd.f32 %v4355_v21, %v4354_v16  ;;  %v600_v30 = vsel %vm581_vm0, %v523_v19, -inf  ;;  %v5507_v16 = vsub.s32 3, %v727_v0 }
 0x114   : > { %v4789_v26 = vpack.i.bf16 %v5427_v23, %v5425_v22  ;;  %v4357_v51 = vpop.f32.mrf.mxu0 }
 0x115   : > { %v524_v27 = vmax.f32 %v4356_v25, 0.0  ;;  %v601_v28 = vsel %vm581_vm0, %v555_v24, -inf }
 0x116   : > { %4790 = vrot.lane.b32.xlu1 %v4789_v26, %s5247_s30  ;;  %v5436_v33 = vmax.f32 %v600_v30, %v601_v28  ;;  %v4358_v54 = vpop.f32.mrf.mxu0 }
 0x117   : > { %v556_v29 = vcombine.high %v524_v27, %v524_v27  ;;  %v603_v31 = vsel %vm581_vm0, %v524_v27, -inf  ;;  %v4359_v26 = vadd.f32 %v4358_v54, %v4357_v51 }
 0x118   : > { %v4360_v55 = vpop.f32.mrf.mxu0 }
 0x119   : > { %v604_v32 = vsel %vm581_vm0, %v556_v29, -inf  ;;  %v5543_v49 = vmax.f32 %v4359_v26, 0.0 }
 0x11a   : > { %v5438_v34 = vmax.f32 %v603_v31, %v604_v32  ;;  %v4361_v56 = vpop.f32.mrf.mxu0 }
 0x11b   : > { %v4362_v28 = vadd.f32 %v4361_v56, %v4360_v55 }
 0x11c   : > { %v4794_v35 = vpack.i.bf16 %v5438_v34, %v5436_v33  ;;  %v5488_v57 = vpop.f32.mrf.mxu0 }
 0x11d   : > { %v5545_v50 = vmax.f32 %v4362_v28, 0.0 }
 0x11e   : > { %4795 = vrot.lane.b32.xlu1 %v4794_v35, %s5247_s30  ;;  %v5490_v58 = vpop.f32.mrf.mxu0 }
 0x120   : > { %v5492_v59 = vpop.f32.mrf.mxu0 }
 0x122   : > { %v5494_v60 = vpop.f32.mrf.mxu0 }
 0x124   : > { %v4369_v63 = vpop.f32.mrf.mxu0 }
 0x126   : > { %v4370_v3 = vpop.f32.mrf.mxu0 }
 0x128   : > { %v5502_v13 = vpop.f32.mrf.mxu0 }
 0x12a   : > { %v4373_v19 = vpop.f32.mrf.mxu0 }
 0x12c   : > { %v5527_v38 = vpop.f32.mrf.mxu0 }
 0x12e   : > { %v5551_v56 = vpop.f32.mrf.mxu0 }
 0x178   : > { %v4781_v62 = vpop.permute.xlu0 %4780 }
 0x179   : > { %v4783_v1 = vunpack.i.h.bf16 %v4781_v62  ;;  %v4782_v2 = vunpack.i.l.bf16 %v4781_v62 }
 0x17b   : > { %v695_v8 = vmax.f32 %v5405_v53, %v4783_v1  ;;  %v694_v9 = vmax.f32 %v5403_v52, %v4782_v2  ;;  %v4944_v1 = vld [vmem:[%s6615_s2 + $0x120] sm:$0xff]  }
 0x17c   : > { %4432 = vmatpush3.bf16.msra.mxu0 %v4944_v1  ;;  %v558_v1 = vcombine.high %v5545_v50, %v5545_v50 }
 0x17d   : > { %v733_v17 = vrot.slane %v695_v8, %v5496_v7  ;;  %v729_v18 = vrot.slane %v694_v9, %v5496_v7  ;;  %v838_v53 = vrot.slane %v695_v8, %v5500_v11  ;;  %v940_v20 = vrot.slane %v695_v8, %v5504_v14 }
 0x17e   : > { %v834_v21 = vrot.slane %v694_v9, %v5500_v11  ;;  %v1038_v29 = vrot.slane %v695_v8, %v5507_v16  ;;  %v1034_v30 = vrot.slane %v694_v9, %v5507_v16 }
 0x180   : > { %v4786_v6 = vpop.permute.xlu0 %4785  ;;  %v895_v39 = vsel %vm790_vm1, %v838_v53, %v834_v21  ;;  %v1095_v47 = vsel %vm790_vm1, %v1038_v29, %v1034_v30  ;;  %v4947_v53 = vld [vmem:[%s6615_s2 + $0x158] sm:$0xff]  }
 0x181   : > { %v4787_v10 = vunpack.i.l.bf16 %v4786_v6  ;;  %v4788_v12 = vunpack.i.h.bf16 %v4786_v6  ;;  %4433 = vmatprep.subr.bf16.mxu0 %v4947_v53 }
 0x183   : > { %v696_v15 = vmax.f32 %v5414_v4, %v4787_v10  ;;  %v5513_v52 = vmax.f32 %v5416_v5, %v4788_v12  ;;  %v936_v4 = vrot.slane %v694_v9, %v5504_v14  ;;  %v791_v5 = vsel %vm790_vm1, %v733_v17, %v729_v18  ;;  %v4945_v9 = vld [vmem:[%s6615_s2 + $0x58] sm:$0xff]  }
 0x184   : > { %v4946_v18 = vld [vmem:[%s6615_s2 + $0x18] sm:$0xff]   ;;  %4389 = vmatprep.subr.bf16.mxu1 %v4945_v9  ;;  %v4957_v9 = vld [vmem:[%s6615_s2 + $0x40] sm:$0xff]  }
 0x185   : > { %v737_v24 = vrot.slane %v696_v15, %v5496_v7  ;;  %v842_v25 = vrot.slane %v696_v15, %v5500_v11  ;;  %v944_v31 = vrot.slane %v696_v15, %v5504_v14  ;;  %v741_v32 = vrot.slane %v5513_v52, %v5496_v7  ;;  %4390 = vmatpush3.bf16.msra.mxu1 %v4946_v18 }
 0x186   : > { %v1042_v35 = vrot.slane %v696_v15, %v5507_v16  ;;  %v997_v40 = vsel %vm790_vm1, %v940_v20, %v936_v4  ;;  %v846_v41 = vrot.slane %v5513_v52, %v5500_v11  ;;  %v948_v43 = vrot.slane %v5513_v52, %v5504_v14 }
 0x187   : > { %v793_v42 = vsel %vm792_vm2, %v737_v24, %v791_v5  ;;  %v896_v44 = vsel %vm792_vm2, %v842_v25, %v895_v39  ;;  %v998_v48 = vsel %vm792_vm2, %v944_v31, %v997_v40  ;;  %v1046_v51 = vrot.slane %v5513_v52, %v5507_v16  ;;  %v4378_v24 = vpop.f32.mrf.mxu0 }
 0x188   : > { %v4791_v27 = vpop.permute.xlu1 %4790  ;;  %v795_v54 = vsel %vm794_vm3, %v741_v32, %v793_v42  ;;  %v1096_v55 = vsel %vm792_vm2, %v1042_v35, %v1095_v47  ;;  %v999_v2 = vsel %vm794_vm3, %v948_v43, %v998_v48  ;;  %v4365_v52 = vadd.f32 %v5490_v58, %v5488_v57  ;;  %v4948_v57 = vld [vmem:[%s6615_s2 + $0x118] sm:$0xff]  }
 0x189   : > { %v4793_v36 = vunpack.i.h.bf16 %v4791_v27  ;;  %v4792_v37 = vunpack.i.l.bf16 %v4791_v27  ;;  %v4374_v20 = vadd.f32 %v4373_v19, %v5502_v13  ;;  %v1097_v25 = vsel %vm794_vm3, %v1046_v51, %v1096_v55  ;;  %4434 = vmatpush3.bf16.msra.mxu0 %v4948_v57  ;;  %v4379_v39 = vpop.f32.mrf.mxu0  ;;  %v4953_v51 = vld [vmem:[%s6615_s2 + $0x48] sm:$0xff]  }
 0x18a   : > { %v4368_v58 = vadd.f32 %v5494_v60, %v5492_v59  ;;  %v4950_v59 = vld [vmem:[%s6615_s2 + $0x10] sm:$0xff]   ;;  %v606_v18 = vsel %vm581_vm0, %v5543_v49, -inf }
 0x18b   : > { %v5538_v45 = vmax.f32 %v5427_v23, %v4793_v36  ;;  %v698_v46 = vmax.f32 %v5425_v22, %v4792_v37  ;;  %v4371_v23 = vadd.f32 %v4370_v3, %v4369_v63  ;;  %v897_v22 = vsel %vm794_vm3, %v846_v41, %v896_v44  ;;  %v4951_v60 = vld [vmem:[%s6615_s2 + $0x150] sm:$0xff]  }
 0x18c   : > { %v530_v42 = vmax.f32 %v4374_v20, 0.0  ;;  %4435 = vmatprep.subr.bf16.mxu0 %v4951_v60  ;;  %v4952_v44 = vld [vmem:[%s6615_s2 + $0x110] sm:$0xff]   ;;  %v4959_v20 = vld [vmem:[%s6615_s2 + $0x140] sm:$0xff]  }
 0x18d   : > { %v745_v61 = vrot.slane %v698_v46, %v5496_v7  ;;  %v850_v62 = vrot.slane %v698_v46, %v5500_v11  ;;  %v952_v0 = vrot.slane %v698_v46, %v5504_v14  ;;  %v749_v63 = vrot.slane %v5538_v45, %v5496_v7  ;;  %4436 = vmatpush3.bf16.msra.mxu0 %v4952_v44 }
 0x18e   : > { %v854_v3 = vrot.slane %v5538_v45, %v5500_v11  ;;  %v1050_v6 = vrot.slane %v698_v46, %v5507_v16  ;;  %v956_v10 = vrot.slane %v5538_v45, %v5504_v14  ;;  %v1054_v26 = vrot.slane %v5538_v45, %v5507_v16 }
 0x18f   : > { %v797_v17 = vsel %vm796_vm4, %v745_v61, %v795_v54  ;;  %v1000_v21 = vsel %vm796_vm4, %v952_v0, %v999_v2  ;;  %v898_v4 = vsel %vm796_vm4, %v850_v62, %v897_v22  ;;  %v5593_v13 = vmax.f32 %v4371_v23, 0.0  ;;  %v4954_v61 = vld [vmem:[%s6615_s2 + $0x8] sm:$0xff]  }
 0x190   : > { %v4796_v8 = vpop.permute.xlu1 %4795  ;;  %v799_v19 = vsel %vm798_vm5, %v749_v63, %v797_v17  ;;  %v1098_v29 = vsel %vm796_vm4, %v1050_v6, %v1097_v25  ;;  %v1001_v30 = vsel %vm798_vm5, %v956_v10, %v1000_v21  ;;  %v899_v31 = vsel %vm798_vm5, %v854_v3, %v898_v4  ;;  %v4955_v62 = vld [vmem:[%s6615_s2 + $0x148] sm:$0xff]   ;;  %v4958_v17 = vld [vmem:[%s6615_s2] sm:$0xff]  }
 0x191   : > { %v4798_v12 = vunpack.i.h.bf16 %v4796_v8  ;;  %v4797_v15 = vunpack.i.l.bf16 %v4796_v8  ;;  %v1099_v43 = vsel %vm798_vm5, %v1054_v26, %v1098_v29  ;;  %v4377_v23 = vadd.f32 %v5551_v56, %v5527_v38  ;;  %4437 = vmatprep.subr.bf16.mxu0 %v4955_v62  ;;  %v4956_v6 = vld [vmem:[%s6615_s2 + $0x108] sm:$0xff]  }
 0x192   : > { %v4380_v22 = vadd.f32 %v4379_v39, %v4378_v24  ;;  %v557_v0 = vcombine.high %v5543_v49, %v5543_v49  ;;  %v527_v38 = vmax.f32 %v4365_v52, 0.0  ;;  %v528_v56 = vmax.f32 %v4368_v58, 0.0  ;;  %4438 = vmatpush3.bf16.msra.mxu0 %v4956_v6 }
 0x193   : > { %v701_v27 = vmax.f32 %v5438_v34, %v4798_v12  ;;  %v700_v28 = vmax.f32 %v5436_v33, %v4797_v15  ;;  %v4949_v34 = vld [vmem:[%s6615_s2 + $0x50] sm:$0xff]   ;;  %v561_v8 = vcombine.high %v5593_v13, %v5593_v13  ;;  %v562_v10 = vcombine.high %v530_v42, %v530_v42  ;;  %4439 = vmatprep.subr.bf16.mxu0 %v4959_v20 }
 0x194   : > { %4391 = vmatprep.subr.bf16.mxu1 %v4949_v34  ;;  %v531_v12 = vmax.f32 %v4377_v23, 0.0  ;;  %v532_v15 = vmax.f32 %v4380_v22, 0.0  ;;  %v607_v53 = vsel %vm581_vm0, %v557_v0, -inf  ;;  %v609_v21 = vsel %vm581_vm0, %v5545_v50, -inf }
 0x195   : > { %v757_v33 = vrot.slane %v701_v27, %v5496_v7  ;;  %v964_v5 = vrot.slane %v701_v27, %v5504_v14  ;;  %v753_v32 = vrot.slane %v700_v28, %v5496_v7  ;;  %v858_v35 = vrot.slane %v700_v28, %v5500_v11  ;;  %4392 = vmatpush3.bf16.msra.mxu1 %v4950_v59 }
 0x196   : > { %v960_v36 = vrot.slane %v700_v28, %v5504_v14  ;;  %v1058_v37 = vrot.slane %v700_v28, %v5507_v16  ;;  %v862_v40 = vrot.slane %v701_v27, %v5500_v11  ;;  %v1062_v41 = vrot.slane %v701_v27, %v5507_v16  ;;  %4393 = vmatprep.subr.bf16.mxu1 %v4953_v51 }
 0x197   : > { %v801_v45 = vsel %vm800_vm6, %v753_v32, %v799_v19  ;;  %v900_v47 = vsel %vm800_vm6, %v858_v35, %v899_v31  ;;  %v610_v4 = vsel %vm581_vm0, %v558_v1, -inf  ;;  %v559_v24 = vcombine.high %v527_v38, %v527_v38 }
 0x198   : > { %v1002_v46 = vsel %vm800_vm6, %v960_v36, %v1001_v30  ;;  %v1100_v48 = vsel %vm800_vm6, %v1058_v37, %v1099_v43  ;;  %v5628_v54 = vsel %vm802_vm7, %v757_v33, %v801_v45  ;;  %v901_v63 = vsel %vm802_vm7, %v862_v40, %v900_v47  ;;  %v4961_v30 = vld [vmem:[%s6615_s2 + $0xf8] sm:$0xff]  }
 0x199   : > { %v5631_v55 = vsel %vm802_vm7, %v964_v5, %v1002_v46  ;;  %v1101_v3 = vsel %vm802_vm7, %v1062_v41, %v1100_v48  ;;  %4394 = vmatpush3.bf16.msra.mxu1 %v4954_v61  ;;  %v560_v25 = vcombine.high %v528_v56, %v528_v56  ;;  %v618_v26 = vsel %vm581_vm0, %v5593_v13, -inf  ;;  %v4960_v13 = vld [vmem:[%s6615_s2 + $0x100] sm:$0xff]   ;;  %v4963_v37 = vld [vmem:[%s6615_s2 + $0x278] sm:$0xff]  }
 0x19a   : > { %v4804_v2 = vpack.i.bf16 %v5628_v54, %v5631_v55  ;;  %v4814_v52 = vpack.i.bf16 %v901_v63, %v1101_v3  ;;  %4395 = vmatprep.subr.bf16.mxu1 %v4957_v9  ;;  %v619_v49 = vsel %vm581_vm0, %v561_v8, -inf  ;;  %v621_v27 = vsel %vm581_vm0, %v530_v42, -inf  ;;  %4440 = vmatpush3.bf16.msra.mxu0 %v4960_v13 }
 0x19b   : > { %v622_v50 = vsel %vm581_vm0, %v562_v10, -inf  ;;  %v563_v28 = vcombine.high %v531_v12, %v531_v12  ;;  %v564_v57 = vcombine.high %v532_v15, %v532_v15  ;;  %v5678_v58 = vmax.f32 %v606_v18, %v607_v53  ;;  %4469 = vmatprep.subr.bf16.mxu0 %v4963_v37 }
 0x19c   : > { %4805 = vrot.lane.b32.xlu1 %v4804_v2, %s5248_s13  ;;  %4800 = vrot.lane.b32.xlu0 %v4804_v2, %s5247_s30  ;;  %v5680_v19 = vmax.f32 %v609_v21, %v610_v4  ;;  %v612_v29 = vsel %vm581_vm0, %v527_v38, -inf  ;;  %v613_v34 = vsel %vm581_vm0, %v559_v24, -inf  ;;  %v615_v33 = vsel %vm581_vm0, %v528_v56, -inf }
 0x19d   : > { %4396 = vmatpush3.bf16.msra.mxu1 %v4958_v17  ;;  %v616_v5 = vsel %vm581_vm0, %v560_v25, -inf  ;;  %v5692_v31 = vmax.f32 %v618_v26, %v619_v49  ;;  %v5694_v59 = vmax.f32 %v621_v27, %v622_v50  ;;  %v624_v60 = vsel %vm581_vm0, %v531_v12, -inf }
 0x19e   : > { %v625_v32 = vsel %vm581_vm0, %v563_v28, -inf  ;;  %v627_v35 = vsel %vm581_vm0, %v532_v15, -inf  ;;  %v628_v36 = vsel %vm581_vm0, %v564_v57, -inf  ;;  %4403 = vmatprep.subr.bf16.mxu1 %v4961_v30  ;;  %v5705_v39 = vmax.f32 %v612_v29, %v613_v34 }
 0x19f   : > { %v5707_v40 = vmax.f32 %v615_v33, %v616_v5  ;;  %v4834_v41 = vpack.i.bf16 %v5680_v19, %v5678_v58  ;;  %v5711_v42 = vmax.f32 %v624_v60, %v625_v32  ;;  %v5713_v43 = vmax.f32 %v627_v35, %v628_v36 }
 0x1a0   : > { %4815 = vrot.lane.b32.xlu1 %v4814_v52, %s5249_s29  ;;  %4810 = vrot.lane.b32.xlu0 %v4804_v2, %s5250_s5  ;;  %v4844_v44 = vpack.i.bf16 %v5694_v59, %v5692_v31 }
 0x1a1   : > { %v4839_v45 = vpack.i.bf16 %v5707_v40, %v5705_v39  ;;  %v4849_v46 = vpack.i.bf16 %v5713_v43, %v5711_v42 }
 0x1a4   : > { %4825 = vrot.lane.b32.xlu1 %v4814_v52, %s5251_s10  ;;  %4820 = vrot.lane.b32.xlu0 %v4814_v52, %s5252_s11 }
 0x1a8   : > { %4835 = vrot.lane.b32.xlu1 %v4834_v41, %s5247_s30  ;;  %4830 = vrot.lane.b32.xlu0 %v4814_v52, %s5253_s20 }
 0x1ac   : > { %4845 = vrot.lane.b32.xlu1 %v4844_v44, %s5247_s30  ;;  %4840 = vrot.lane.b32.xlu0 %v4839_v45, %s5247_s30  ;;  %v4965_v44 = vld [vmem:[%s6615_s2 + $0xf0] sm:$0xff]  }
 0x1b0   : > { %4850 = vrot.lane.b32.xlu0 %v4849_v46, %s5247_s30 }
 0x20e   : > { %v4806_v47 = vpop.permute.xlu1 %4805  ;;  %v4801_v48 = vpop.permute.xlu0 %4800 }
 0x20f   : > { %v4803_v51 = vunpack.i.h.bf16 %v4801_v48  ;;  %v4802_v23 = vunpack.i.l.bf16 %v4801_v48  ;;  %v4808_v22 = vunpack.i.h.bf16 %v4806_v47  ;;  %v4807_v61 = vunpack.i.l.bf16 %v4806_v47 }
 0x211   : > { %v1134_v62 = vsel %vm1133_vm8, %v5628_v54, %v4803_v51  ;;  %v1154_v0 = vsel %vm1133_vm8, %v5631_v55, %v4802_v23 }
 0x212   : > { %v4816_v1 = vpop.permute.xlu1 %4815  ;;  %v4811_v2 = vpop.permute.xlu0 %4810  ;;  %v1137_v6 = vsel %vm1136_vm9, %v1134_v62, %v4808_v22  ;;  %v1156_v8 = vsel %vm1136_vm9, %v1154_v0, %v4807_v61 }
 0x213   : > { %v4813_v38 = vunpack.i.h.bf16 %v4811_v2  ;;  %v4812_v56 = vunpack.i.l.bf16 %v4811_v2  ;;  %v4818_v63 = vunpack.i.h.bf16 %v4816_v1  ;;  %v4817_v3 = vunpack.i.l.bf16 %v4816_v1 }
 0x215   : > { %v1140_v9 = vsel %vm1139_vm10, %v1137_v6, %v4813_v38  ;;  %v1158_v10 = vsel %vm1139_vm10, %v1156_v8, %v4812_v56 }
 0x216   : > { %v4826_v54 = vpop.permute.xlu1 %4825  ;;  %v4821_v55 = vpop.permute.xlu0 %4820  ;;  %v1143_v53 = vsel %vm1142_vm11, %v1140_v9, %v4818_v63  ;;  %v1160_v52 = vsel %vm1142_vm11, %v1158_v10, %v4817_v3 }
 0x217   : > { %v4823_v12 = vunpack.i.h.bf16 %v4821_v55  ;;  %v4822_v15 = vunpack.i.l.bf16 %v4821_v55  ;;  %v4828_v17 = vunpack.i.h.bf16 %v4826_v54  ;;  %v4827_v18 = vunpack.i.l.bf16 %v4826_v54  ;;  %v4966_v55 = vld [vmem:[%s6615_s2 + $0xb0] sm:$0xff]  }
 0x219   : > { %v1146_v20 = vsel %vm1145_vm12, %v1143_v53, %v4823_v12  ;;  %v1162_v21 = vsel %vm1145_vm12, %v1160_v52, %v4822_v15  ;;  %v4969_v12 = vld [vmem:[%s6615_s2 + $0xe8] sm:$0xff]  }
 0x21a   : > { %v4836_v4 = vpop.permute.xlu1 %4835  ;;  %v4831_v24 = vpop.permute.xlu0 %4830  ;;  %v1149_v50 = vsel %vm1148_vm13, %v1146_v20, %v4828_v17  ;;  %v1164_v28 = vsel %vm1148_vm13, %v1162_v21, %v4827_v18 }
 0x21b   : > { %v4838_v25 = vunpack.i.h.bf16 %v4836_v4  ;;  %v4837_v26 = vunpack.i.l.bf16 %v4836_v4  ;;  %v4833_v49 = vunpack.i.h.bf16 %v4831_v24  ;;  %v4832_v27 = vunpack.i.l.bf16 %v4831_v24 }
 0x21d   : > { %v703_v57 = vmax.f32 %v5680_v19, %v4838_v25  ;;  %v702_v13 = vmax.f32 %v5678_v58, %v4837_v26  ;;  %v5743_v29 = vsel %vm1151_vm14, %v1149_v50, %v4833_v49  ;;  %v5746_v34 = vsel %vm1151_vm14, %v1164_v28, %v4832_v27  ;;  %v4962_v19 = vld [vmem:[%s6615_s2 + $0xb8] sm:$0xff]   ;;  %v4970_v27 = vld [vmem:[%s6615_s2 + $0xa8] sm:$0xff]  }
 0x21e   : > { %v4846_v33 = vpop.permute.xlu1 %4845  ;;  %v4841_v5 = vpop.permute.xlu0 %4840  ;;  %v1229_v30 = vpack.c.bf16 %v5746_v34, %v5746_v34  ;;  %v1228_v60 = vpack.c.bf16 %v5743_v29, %v5743_v29  ;;  %v1171_v58 = vrot.slane %v5746_v34, 1  ;;  %v1175_v32 = vrot.slane %v5746_v34, 2 }
 0x21f   : > { %v765_v35 = vrot.slane %v703_v57, %v5496_v7  ;;  %v870_v36 = vrot.slane %v703_v57, %v5500_v11  ;;  %v972_v37 = vrot.slane %v703_v57, %v5504_v14  ;;  %v1070_v41 = vrot.slane %v703_v57, %v5507_v16 }
 0x220   : > { %v761_v45 = vrot.slane %v702_v13, %v5496_v7  ;;  %v866_v46 = vrot.slane %v702_v13, %v5500_v11  ;;  %v968_v47 = vrot.slane %v702_v13, %v5504_v14  ;;  %v1066_v48 = vrot.slane %v702_v13, %v5507_v16  ;;  %3341 = vmatprep.mubr.bf16.mxu1 %v1229_v30 }
 0x221   : > { %v4848_v51 = vunpack.i.h.bf16 %v4846_v33  ;;  %v4847_v23 = vunpack.i.l.bf16 %v4846_v33  ;;  %v4843_v22 = vunpack.i.h.bf16 %v4841_v5  ;;  %v4842_v61 = vunpack.i.l.bf16 %v4841_v5  ;;  %3342 = vmatmul.mubr.bf16.vlgmr.msra.gmra.mxu1 %v1228_v60  ;;  %v4973_v33 = vld [vmem:[%s6615_s2 + $0xe0] sm:$0xff]  }
 0x222   : > { %v804_v62 = vsel %vm790_vm1, %v765_v35, %v761_v45  ;;  %v902_v0 = vsel %vm790_vm1, %v870_v36, %v866_v46  ;;  %v1004_v1 = vsel %vm790_vm1, %v972_v37, %v968_v47  ;;  %v1102_v2 = vsel %vm790_vm1, %v1070_v41, %v1066_v48  ;;  %4404 = vmatpush3.bf16.msra.mxu1 %v4962_v19  ;;  %v4851_v38 = vpop.permute.xlu0 %4850 }
 0x223   : > { %v5773_v56 = vmax.f32 %v5694_v59, %v4848_v51  ;;  %v5776_v63 = vmax.f32 %v5692_v31, %v4847_v23  ;;  %v705_v3 = vmax.f32 %v5707_v40, %v4843_v22  ;;  %v704_v6 = vmax.f32 %v5705_v39, %v4842_v61  ;;  %4405 = vmatprep.subr.bf16.mxu1 %v4965_v44  ;;  %v4974_v44 = vld [vmem:[%s6615_s2 + $0xa0] sm:$0xff]   ;;  %v4964_v51 = vld [vmem:[%s6615_s2 + $0x238] sm:$0xff]   ;;  %v4967_v61 = vld [vmem:[%s6615_s2 + $0x270] sm:$0xff]  }
 0x224   : > { %v4853_v8 = vunpack.i.h.bf16 %v4851_v38  ;;  %v4852_v9 = vunpack.i.l.bf16 %v4851_v38  ;;  %v1231_v10 = vpack.c.bf16 %v1171_v58, %v1171_v58  ;;  %v1233_v54 = vpack.c.bf16 %v1175_v32, %v1175_v32 }
 0x225   : > { %v781_v59 = vrot.slane %v5773_v56, %v5496_v7  ;;  %v886_v31 = vrot.slane %v5773_v56, %v5500_v11  ;;  %v988_v40 = vrot.slane %v5773_v56, %v5504_v14  ;;  %v1086_v39 = vrot.slane %v5773_v56, %v5507_v16  ;;  %v4975_v56 = vld [vmem:[%s6615_s2 + $0x260] sm:$0xff]  }
 0x226   : > { %v777_v15 = vrot.slane %v5776_v63, %v5496_v7  ;;  %v882_v17 = vrot.slane %v5776_v63, %v5500_v11  ;;  %v984_v18 = vrot.slane %v5776_v63, %v5504_v14  ;;  %v1082_v53 = vrot.slane %v5776_v63, %v5507_v16  ;;  %3381 = vmatprep.mubr.bf16.mxu1 %v1231_v10 }
 0x227   : > { %v773_v52 = vrot.slane %v705_v3, %v5496_v7  ;;  %v878_v20 = vrot.slane %v705_v3, %v5500_v11  ;;  %v980_v21 = vrot.slane %v705_v3, %v5504_v14  ;;  %v1078_v4 = vrot.slane %v705_v3, %v5507_v16  ;;  %3421 = vmatprep.mubr.bf16.mxu0 %v1233_v54  ;;  %v4978_v54 = vld [vmem:[%s6615_s2 + $0x98] sm:$0xff]  }
 0x228   : > { %v769_v24 = vrot.slane %v704_v6, %v5496_v7  ;;  %v874_v25 = vrot.slane %v704_v6, %v5500_v11  ;;  %v976_v26 = vrot.slane %v704_v6, %v5504_v14  ;;  %v1074_v49 = vrot.slane %v704_v6, %v5507_v16  ;;  %4406 = vmatpush3.bf16.msra.mxu1 %v4966_v55  ;;  %v4968_v6 = vld [vmem:[%s6615_s2 + $0x230] sm:$0xff]   ;;  %v4971_v55 = vld [vmem:[%s6615_s2 + $0x268] sm:$0xff]  }
 0x229   : > { %v709_v50 = vmax.f32 %v5713_v43, %v4853_v8  ;;  %v708_v28 = vmax.f32 %v5711_v42, %v4852_v9  ;;  %v1174_v57 = vrot.slane %v5743_v29, 2  ;;  %v1183_v13 = vrot.slane %v5746_v34, 4  ;;  %4407 = vmatprep.subr.bf16.mxu1 %v4969_v12 }
 0x22a   : > { %v805_v5 = vsel %vm792_vm2, %v769_v24, %v804_v62  ;;  %v903_v30 = vsel %vm792_vm2, %v874_v25, %v902_v0  ;;  %v1005_v60 = vsel %vm792_vm2, %v976_v26, %v1004_v1  ;;  %v1103_v19 = vsel %vm792_vm2, %v1074_v49, %v1102_v2  ;;  %v4980_v24 = vld [vmem:[%s6615_s2 + $0x218] sm:$0xff]   ;;  %v4990_v25 = vld [vmem:[%s6615_s2 + $0x80] sm:$0xff]   ;;  %v4983_v26 = vld [vmem:[%s6615_s2 + $0x250] sm:$0xff]  }
 0x22b   : > { %v806_v43 = vsel %vm794_vm3, %v773_v52, %v805_v5  ;;  %v904_v42 = vsel %vm794_vm3, %v878_v20, %v903_v30  ;;  %v1006_v58 = vsel %vm794_vm3, %v980_v21, %v1005_v60  ;;  %v1104_v32 = vsel %vm794_vm3, %v1078_v4, %v1103_v19  ;;  %v4976_v52 = vld [vmem:[%s6615_s2 + $0x220] sm:$0xff]   ;;  %v4986_v20 = vld [vmem:[%s6615_s2 + $0x88] sm:$0xff]   ;;  %v4979_v21 = vld [vmem:[%s6615_s2 + $0x258] sm:$0xff]  }
 0x22c   : > { %v789_v35 = vrot.slane %v709_v50, %v5496_v7  ;;  %v894_v36 = vrot.slane %v709_v50, %v5500_v11  ;;  %v996_v37 = vrot.slane %v709_v50, %v5504_v14  ;;  %v1094_v41 = vrot.slane %v709_v50, %v5507_v16  ;;  %4408 = vmatpush3.bf16.msra.mxu1 %v4970_v27  ;;  %v4989_v4 = vld [vmem:[%s6615_s2 + $0xc0] sm:$0xff]   ;;  %v4993_v27 = vld [vmem:[%s6615_s2 + $0x1f8] sm:$0xff]   ;;  %v4997_v5 = vld [vmem:[%s6615_s2 + $0x1f0] sm:$0xff]  }
 0x22d   : > { %v785_v45 = vrot.slane %v708_v28, %v5496_v7  ;;  %v890_v46 = vrot.slane %v708_v28, %v5500_v11  ;;  %v992_v47 = vrot.slane %v708_v28, %v5504_v14  ;;  %v1090_v48 = vrot.slane %v708_v28, %v5507_v16  ;;  %4409 = vmatprep.subr.bf16.mxu1 %v4973_v33  ;;  %v4977_v11 = vld [vmem:[%s6615_s2 + $0xd8] sm:$0xff]   ;;  %v4982_v16 = vld [vmem:[%s6615_s2 + $0x90] sm:$0xff]   ;;  %v4988_v60 = vld [vmem:[%s6615_s2 + $0x208] sm:$0xff]  }
 0x22e   : > { %v1232_v23 = vpack.c.bf16 %v1174_v57, %v1174_v57  ;;  %v1237_v22 = vpack.c.bf16 %v1183_v13, %v1183_v13  ;;  %v807_v62 = vsel %vm796_vm4, %v777_v15, %v806_v43  ;;  %v1007_v7 = vsel %vm796_vm4, %v984_v18, %v1006_v58  ;;  %v4984_v28 = vld [vmem:[%s6615_s2 + $0x210] sm:$0xff]   ;;  %v4994_v57 = vld [vmem:[%s6615_s2 + $0x1b8] sm:$0xff]   ;;  %v4987_v13 = vld [vmem:[%s6615_s2 + $0x248] sm:$0xff]  }
 0x22f   : > { %v808_v14 = vsel %vm798_vm5, %v781_v59, %v807_v62  ;;  %v1008_v0 = vsel %vm798_vm5, %v988_v40, %v1007_v7  ;;  %v905_v1 = vsel %vm796_vm4, %v882_v17, %v904_v42  ;;  %v1105_v2 = vsel %vm796_vm4, %v1082_v53, %v1104_v32  ;;  %v4972_v17 = vld [vmem:[%s6615_s2 + $0x228] sm:$0xff]   ;;  %v4998_v19 = vld [vmem:[%s6615_s2 + $0x1b0] sm:$0xff]   ;;  %v4991_v43 = vld [vmem:[%s6615_s2 + $0x240] sm:$0xff]  }
 0x230   : > { %3422 = vmatmul.mubr.bf16.vlgmr.msra.gmra.mxu0 %v1232_v23  ;;  %v809_v38 = vsel %vm800_vm6, %v785_v45, %v808_v14  ;;  %v1009_v63 = vsel %vm800_vm6, %v992_v47, %v1008_v0  ;;  %4410 = vmatpush3.bf16.msra.mxu1 %v4974_v44  ;;  %v906_v3 = vsel %vm798_vm5, %v886_v31, %v905_v1  ;;  %v4981_v31 = vld [vmem:[%s6615_s2 + $0xd0] sm:$0xff]   ;;  %v4985_v53 = vld [vmem:[%s6615_s2 + $0xc8] sm:$0xff]   ;;  %v1170_v49 = vrot.slane %v5743_v29, 1  ;;  %v4992_v58 = vld [vmem:[%s6615_s2 + $0x200] sm:$0xff]  }
 0x231   : > { %4470 = vmatpush3.bf16.msra.mxu0 %v4964_v51  ;;  %3501 = vmatprep.mubr.bf16.mxu0 %v1237_v22  ;;  %v5861_v8 = vsel %vm802_vm7, %v789_v35, %v809_v38  ;;  %v5864_v9 = vsel %vm802_vm7, %v996_v37, %v1009_v63  ;;  %v907_v10 = vsel %vm800_vm6, %v890_v46, %v906_v3  ;;  %v1179_v50 = vrot.slane %v5746_v34, 3  ;;  %v5001_v42 = vld [vmem:[%s6615_s2 + $0x1e8] sm:$0xff]   ;;  %v5005_v37 = vld [vmem:[%s6615_s2 + $0x1e0] sm:$0xff]   ;;  %v4996_v44 = vld [vmem:[%s6615_s2 + $0x338] sm:$0xff]  }
 0x232   : > { %4471 = vmatprep.subr.bf16.mxu0 %v4967_v61  ;;  %v4859_v59 = vpack.i.bf16 %v5861_v8, %v5864_v9  ;;  %4411 = vmatprep.subr.bf16.mxu1 %v4977_v11  ;;  %v908_v40 = vsel %vm802_vm7, %v894_v36, %v907_v10  ;;  %v1106_v12 = vsel %vm798_vm5, %v1086_v39, %v1105_v2  ;;  %v5002_v32 = vld [vmem:[%s6615_s2 + $0x1a8] sm:$0xff]   ;;  %v1182_v35 = vrot.slane %v5743_v29, 4  ;;  %v4995_v36 = vld [vmem:[%s6615_s2 + $0x378] sm:$0xff]   ;;  %v4999_v46 = vld [vmem:[%s6615_s2 + $0x370] sm:$0xff]  }
 0x233   : > { %v1107_v15 = vsel %vm800_vm6, %v1090_v48, %v1106_v12  ;;  %v1230_v33 = vpack.c.bf16 %v1170_v49, %v1170_v49  ;;  %v1235_v30 = vpack.c.bf16 %v1179_v50, %v1179_v50  ;;  %v5006_v47 = vld [vmem:[%s6615_s2 + $0x1a0] sm:$0xff]   ;;  %v5009_v51 = vld [vmem:[%s6615_s2 + $0x1d8] sm:$0xff]   ;;  %v5000_v23 = vld [vmem:[%s6615_s2 + $0x330] sm:$0xff]  }
 0x234   : > { %4860 = vrot.lane.b32.xlu0 %v4859_v59, %s5248_s13  ;;  %4855 = vrot.lane.b32.xlu1 %v4859_v59, %s5247_s30  ;;  %v1108_v18 = vsel %vm802_vm7, %v1094_v41, %v1107_v15  ;;  %v1191_v41 = vrot.slane %v5746_v34, 6  ;;  %v1236_v45 = vpack.c.bf16 %v1182_v35, %v1182_v35  ;;  %v5003_v22 = vld [vmem:[%s6615_s2 + $0x368] sm:$0xff]   ;;  %v5010_v61 = vld [vmem:[%s6615_s2 + $0x198] sm:$0xff]   ;;  %s5191_s30 = scalar_lea.vmem %s5190_s28, 32 }
 0x235   : > { %4472 = vmatpush3.bf16.msra.mxu0 %v4968_v6  ;;  %4412 = vmatpush3.bf16.msra.mxu1 %v4978_v54  ;;  %v4869_v39 = vpack.i.bf16 %v908_v40, %v1108_v18  ;;  %v5013_v62 = vld [vmem:[%s6615_s2 + $0x1d0] sm:$0xff]   ;;  %v5004_v7 = vld [vmem:[%s6615_s2 + $0x328] sm:$0xff]   ;;  %v5007_v11 = vld [vmem:[%s6615_s2 + $0x360] sm:$0xff]   ;;  %v1178_v54 = vrot.slane %v5743_v29, 3 }
 0x236   : > { %4473 = vmatprep.subr.bf16.mxu0 %v4971_v55  ;;  %4413 = vmatprep.subr.bf16.mxu1 %v4981_v31  ;;  %v1241_v48 = vpack.c.bf16 %v1191_v41, %v1191_v41  ;;  %v5014_v14 = vld [vmem:[%s6615_s2 + $0x190] sm:$0xff]   ;;  %v5017_v0 = vld [vmem:[%s6615_s2 + $0x1c8] sm:$0xff]   ;;  %v5008_v1 = vld [vmem:[%s6615_s2 + $0x320] sm:$0xff]   ;;  %v1187_v31 = vrot.slane %v5746_v34, 5  ;;  %v1186_v41 = vrot.slane %v5743_v29, 5 }
 0x237   : > { %v5011_v2 = vld [vmem:[%s6615_s2 + $0x358] sm:$0xff]   ;;  %v5018_v38 = vld [vmem:[%s6615_s2 + $0x188] sm:$0xff]   ;;  %v5021_v63 = vld [vmem:[%s6615_s2 + $0x1c0] sm:$0xff]   ;;  %v1234_v15 = vpack.c.bf16 %v1178_v54, %v1178_v54 }
 0x238   : > { %4870 = vrot.lane.b32.xlu0 %v4869_v39, %s5249_s29  ;;  %4865 = vrot.lane.b32.xlu1 %v4859_v59, %s5250_s5  ;;  %v5012_v3 = vld [vmem:[%s6615_s2 + $0x318] sm:$0xff]   ;;  %v5015_v6 = vld [vmem:[%s6615_s2 + $0x350] sm:$0xff]   ;;  %s6578_s5 = scalar_lea.hbm %s6617_s4, %s4313_s12 }
 0x239   : > { %4474 = vmatpush3.bf16.msra.mxu0 %v4972_v17  ;;  %4414 = vmatpush3.bf16.msra.mxu1 %v4982_v16  ;;  %v5022_v10 = vld [vmem:[%s6615_s2 + $0x180] sm:$0xff]   ;;  %v5025_v55 = vld [vmem:[%s6615_s2 + $0x2f8] sm:$0xff]   ;;  %v5016_v59 = vld [vmem:[%s6615_s2 + $0x310] sm:$0xff]   ;;  %v1239_v16 = vpack.c.bf16 %v1187_v31, %v1187_v31  ;;  %v1194_v31 = vrot.slane %v5743_v29, 7 }
 0x23a   : > { %4475 = vmatprep.subr.bf16.mxu0 %v4975_v56  ;;  %4415 = vmatprep.subr.bf16.mxu1 %v4985_v53  ;;  %v5019_v40 = vld [vmem:[%s6615_s2 + $0x348] sm:$0xff]   ;;  %v5026_v12 = vld [vmem:[%s6615_s2 + $0x2b8] sm:$0xff]   ;;  %v5027_v17 = vld [vmem:[%s6615_s2 + $0x2f0] sm:$0xff]  }
 0x23b   : > { %v5020_v18 = vld [vmem:[%s6615_s2 + $0x308] sm:$0xff]   ;;  %v5023_v56 = vld [vmem:[%s6615_s2 + $0x340] sm:$0xff]   ;;  %v5033_v50 = vld [vmem:[%s6615_s2 + $0x2d8] sm:$0xff]  }
 0x23c   : > { %4880 = vrot.lane.b32.xlu0 %v4869_v39, %s5251_s10  ;;  %4875 = vrot.lane.b32.xlu1 %v4869_v39, %s5252_s11  ;;  %v5029_v53 = vld [vmem:[%s6615_s2 + $0x2e8] sm:$0xff]   ;;  %v5032_v49 = vld [vmem:[%s6615_s2 + $0x2a0] sm:$0xff]  }
 0x23d   : > { %4476 = vmatpush3.bf16.msra.mxu0 %v4976_v52  ;;  %4416 = vmatpush3.bf16.msra.mxu1 %v4986_v20  ;;  %v5024_v52 = vld [vmem:[%s6615_s2 + $0x300] sm:$0xff]   ;;  %v1190_v20 = vrot.slane %v5743_v29, 6  ;;  %v5068_v35 = vld [vmem:[%s6615_s2 + $0x418] sm:$0xff]   ;;  %v5058_v54 = vld [vmem:[%s6615_s2 + $0x388] sm:$0xff]  }
 0x23e   : > { %4477 = vmatprep.subr.bf16.mxu0 %v4979_v21  ;;  %4417 = vmatprep.subr.bf16.mxu1 %v4989_v4  ;;  %v5030_v21 = vld [vmem:[%s6615_s2 + $0x2a8] sm:$0xff]   ;;  %v5051_v4 = vld [vmem:[%s6615_s2 + $0x478] sm:$0xff]   ;;  %v5071_v29 = vld [vmem:[%s6615_s2 + $0x4b0] sm:$0xff]  }
 0x240   : > { %4885 = vrot.lane.b32.xlu1 %v4869_v39, %s5253_s20  ;;  %v5028_v39 = vld [vmem:[%s6615_s2 + $0x2b0] sm:$0xff]   ;;  %s3964_s20 = sshll.u32 %s189_s14, 4  ;;  %s3965_s20 = int_to_ptr.vmem [resolvable:$true] %s3964_s20 }
 0x241   : > { %4478 = vmatpush3.bf16.msra.mxu0 %v4980_v24  ;;  %4418 = vmatpush3.bf16.msra.mxu1 %v4990_v25  ;;  %v5031_v24 = vld [vmem:[%s6615_s2 + $0x2e0] sm:$0xff]   ;;  %v5052_v25 = vld [vmem:[%s6615_s2 + $0x438] sm:$0xff]   ;;  %s5185_s27 = scalar_lea.vmem %s3965_s20, 16  ;;  %p5192_p0 = scmp.lt.s32.totalorder %s3965_s20, %s5190_s28 }
 0x242   : > { %4479 = vmatprep.subr.bf16.mxu0 %v4983_v26  ;;  %4447 = vmatprep.subr.bf16.mxu1 %v4993_v27  ;;  %v1240_v26 = vpack.c.bf16 %v1190_v20, %v1190_v20  ;;  %v5055_v27 = vld [vmem:[%s6615_s2 + $0x470] sm:$0xff]   ;;  %p5186_p11 = scmp.ne.s32.totalorder %s3965_s20, %s5185_s27  ;;  %p5193_p1 = scmp.lt.s32.totalorder %s5191_s30, %s5185_s27 }
 0x244   : > { %3382 = vmatmul.mubr.bf16.vlgmr.msra.gmra.mxu1 %v1230_v33  ;;  %v5035_v33 = vld [vmem:[%s6615_s2 + $0x2d0] sm:$0xff]   ;;  %p5187_p12 = pnand %p5186_p11, %p5318_p5  ;;  %p5194_p2 = por %p5193_p1, %p5192_p0 }
 0x245   : > { %4480 = vmatpush3.bf16.msra.mxu0 %v4984_v28  ;;  %4448 = vmatpush3.bf16.msra.mxu1 %v4994_v57  ;;  %v5056_v28 = vld [vmem:[%s6615_s2 + $0x430] sm:$0xff]   ;;  %v5034_v57 = vld [vmem:[%s6615_s2 + $0x298] sm:$0xff]  }
 0x246   : > { %4481 = vmatprep.subr.bf16.mxu0 %v4987_v13  ;;  %3461 = vmatprep.mubr.bf16.mxu1 %v1235_v30  ;;  %v5059_v13 = vld [vmem:[%s6615_s2 + $0x468] sm:$0xff]   ;;  %v5036_v30 = vld [vmem:[%s6615_s2 + $0x290] sm:$0xff]   ;;  %p5188_p13 = pneg %p5187_p12 }
 0x247   : > { %4449 = vmatprep.subr.bf16.mxu1 %v4997_v5  ;;  %v5060_v5 = vld [vmem:[%s6615_s2 + $0x428] sm:$0xff]  }
 0x248   : > { %p5195_p3 = pnand %p5194_p2, %p5188_p13 }
 0x249   : > { %4482 = vmatpush3.bf16.msra.mxu0 %v4988_v60  ;;  %4450 = vmatpush3.bf16.msra.mxu1 %v4998_v19  ;;  %v5063_v60 = vld [vmem:[%s6615_s2 + $0x460] sm:$0xff]   ;;  %v5037_v19 = vld [vmem:[%s6615_s2 + $0x2c8] sm:$0xff]  }
 0x24a   : > { %4483 = vmatprep.subr.bf16.mxu0 %v4991_v43  ;;  %4451 = vmatprep.subr.bf16.mxu1 %v5001_v42  ;;  %v5064_v43 = vld [vmem:[%s6615_s2 + $0x420] sm:$0xff]   ;;  %v5038_v42 = vld [vmem:[%s6615_s2 + $0x288] sm:$0xff]  }
 0x24d   : > { %4484 = vmatpush3.bf16.msra.mxu0 %v4992_v58  ;;  %4452 = vmatpush3.bf16.msra.mxu1 %v5002_v32  ;;  %v5066_v58 = vld [vmem:[%s6615_s2 + $0x458] sm:$0xff]   ;;  %v5039_v32 = vld [vmem:[%s6615_s2 + $0x2c0] sm:$0xff]  }
 0x24e   : > { %4513 = vmatprep.subr.bf16.mxu0 %v4995_v36  ;;  %4453 = vmatprep.subr.bf16.mxu1 %v5005_v37  ;;  %v5040_v36 = vld [vmem:[%s6615_s2 + $0x280] sm:$0xff]   ;;  %v5070_v37 = vld [vmem:[%s6615_s2 + $0x450] sm:$0xff]  }
 0x250   : > { %3502 = vmatmul.mubr.bf16.vlgmr.msra.gmra.mxu0 %v1236_v45  ;;  %v1195_v45 = vrot.slane %v5746_v34, 7  ;;  %v5074_v34 = vld [vmem:[%s6615_s2 + $0x448] sm:$0xff]  }
 0x251   : > { %4514 = vmatpush3.bf16.msra.mxu0 %v4996_v44  ;;  %3581 = vmatprep.mubr.bf16.mxu0 %v1241_v48  ;;  %v5041_v44 = vld [vmem:[%s6615_s2 + $0x3f8] sm:$0xff]   ;;  %v1238_v48 = vpack.c.bf16 %v1186_v41, %v1186_v41 }
 0x252   : > { %4515 = vmatprep.subr.bf16.mxu0 %v4999_v46  ;;  %4454 = vmatpush3.bf16.msra.mxu1 %v5006_v47  ;;  %v5072_v46 = vld [vmem:[%s6615_s2 + $0x410] sm:$0xff]   ;;  %v5042_v47 = vld [vmem:[%s6615_s2 + $0x3b8] sm:$0xff]  }
 0x253   : > { %4455 = vmatprep.subr.bf16.mxu1 %v5009_v51  ;;  %v5043_v51 = vld [vmem:[%s6615_s2 + $0x3f0] sm:$0xff]  }
 0x255   : > { %4516 = vmatpush3.bf16.msra.mxu0 %v5000_v23  ;;  %v1243_v23 = vpack.c.bf16 %v1195_v45, %v1195_v45  ;;  %v5082_v45 = vld [vmem:[%s6615_s2 + $0x498] sm:$0xff]  }
 0x256   : > { %4517 = vmatprep.subr.bf16.mxu0 %v5003_v22  ;;  %4456 = vmatpush3.bf16.msra.mxu1 %v5010_v61  ;;  %v5076_v22 = vld [vmem:[%s6615_s2 + $0x408] sm:$0xff]   ;;  %v5044_v61 = vld [vmem:[%s6615_s2 + $0x3b0] sm:$0xff]  }
 0x257   : > { %4457 = vmatprep.subr.bf16.mxu1 %v5013_v62  ;;  %v5078_v62 = vld [vmem:[%s6615_s2 + $0x440] sm:$0xff]  }
 0x259   : > { %4518 = vmatpush3.bf16.msra.mxu0 %v5004_v7  ;;  %v5045_v7 = vld [vmem:[%s6615_s2 + $0x3e8] sm:$0xff]  }
 0x25a   : > { %4519 = vmatprep.subr.bf16.mxu0 %v5007_v11  ;;  %4458 = vmatpush3.bf16.msra.mxu1 %v5014_v14  ;;  %v5080_v11 = vld [vmem:[%s6615_s2 + $0x400] sm:$0xff]   ;;  %v5046_v14 = vld [vmem:[%s6615_s2 + $0x3a8] sm:$0xff]  }
 0x25b   : > { %4459 = vmatprep.subr.bf16.mxu1 %v5017_v0  ;;  %v5083_v0 = vld [vmem:[%s6615_s2 + $0x578] sm:$0xff]  }
 0x25d   : > { %4520 = vmatpush3.bf16.msra.mxu0 %v5008_v1  ;;  %v5047_v1 = vld [vmem:[%s6615_s2 + $0x3e0] sm:$0xff]  }
 0x25e   : > { %4521 = vmatprep.subr.bf16.mxu0 %v5011_v2  ;;  %4460 = vmatpush3.bf16.msra.mxu1 %v5018_v38  ;;  %v5048_v2 = vld [vmem:[%s6615_s2 + $0x3a0] sm:$0xff]   ;;  %v5049_v38 = vld [vmem:[%s6615_s2 + $0x3d8] sm:$0xff]  }
 0x25f   : > { %4461 = vmatprep.subr.bf16.mxu1 %v5021_v63  ;;  %v5050_v63 = vld [vmem:[%s6615_s2 + $0x398] sm:$0xff]  }
 0x261   : > { %4522 = vmatpush3.bf16.msra.mxu0 %v5012_v3  ;;  %v5053_v3 = vld [vmem:[%s6615_s2 + $0x3d0] sm:$0xff]  }
 0x262   : > { %4523 = vmatprep.subr.bf16.mxu0 %v5015_v6  ;;  %4462 = vmatpush3.bf16.msra.mxu1 %v5022_v10  ;;  %v5054_v6 = vld [vmem:[%s6615_s2 + $0x390] sm:$0xff]   ;;  %v5057_v10 = vld [vmem:[%s6615_s2 + $0x3c8] sm:$0xff]  }
 0x263   : > { %4491 = vmatprep.subr.bf16.mxu1 %v5025_v55  ;;  %v5061_v55 = vld [vmem:[%s6615_s2 + $0x3c0] sm:$0xff]  }
 0x265   : > { %4524 = vmatpush3.bf16.msra.mxu0 %v5016_v59  ;;  %3462 = vmatmul.mubr.bf16.vlgmr.msra.gmra.mxu1 %v1234_v15  ;;  %v5062_v59 = vld [vmem:[%s6615_s2 + $0x380] sm:$0xff]   ;;  %v1242_v15 = vpack.c.bf16 %v1194_v31, %v1194_v31 }
 0x266   : > { %4525 = vmatprep.subr.bf16.mxu0 %v5019_v40  ;;  %4492 = vmatpush3.bf16.msra.mxu1 %v5026_v12  ;;  %v5065_v40 = vld [vmem:[%s6615_s2 + $0x4f8] sm:$0xff]   ;;  %v5095_v31 = vld [vmem:[%s6615_s2 + $0x560] sm:$0xff]  }
 0x267   : > { %3541 = vmatprep.mubr.bf16.mxu1 %v1239_v16  ;;  %4493 = vmatprep.subr.bf16.mxu1 %v5027_v17  ;;  %v5067_v12 = vld [vmem:[%s6615_s2 + $0x4b8] sm:$0xff]   ;;  %v5069_v17 = vld [vmem:[%s6615_s2 + $0x4f0] sm:$0xff]  }
 0x269   : > { %4526 = vmatpush3.bf16.msra.mxu0 %v5020_v18 }
 0x26a   : > { %4527 = vmatprep.subr.bf16.mxu0 %v5023_v56  ;;  %4494 = vmatpush3.bf16.msra.mxu1 %v5028_v39 }
 0x26b   : > { %4495 = vmatprep.subr.bf16.mxu1 %v5029_v53  ;;  %v5073_v53 = vld [vmem:[%s6615_s2 + $0x4e8] sm:$0xff]  }
 0x26d   : > { %4528 = vmatpush3.bf16.msra.mxu0 %v5024_v52 }
 0x26e   : > { %4496 = vmatpush3.bf16.msra.mxu1 %v5030_v21  ;;  %4557 = vmatprep.subr.bf16.mxu0 %v5051_v4 }
 0x26f   : > { %4497 = vmatprep.subr.bf16.mxu1 %v5031_v24 }
 0x270   : > { %3582 = vmatmul.mubr.bf16.vlgmr.msra.gmra.mxu0 %v1240_v26  ;;  %v5075_v26 = vld [vmem:[%s6615_s2 + $0x4a8] sm:$0xff]  }
 0x271   : > { %4558 = vmatpush3.bf16.msra.mxu0 %v5052_v25 }
 0x272   : > { %4498 = vmatpush3.bf16.msra.mxu1 %v5032_v49  ;;  %4559 = vmatprep.subr.bf16.mxu0 %v5055_v27 }
 0x273   : > { %4499 = vmatprep.subr.bf16.mxu1 %v5033_v50  ;;  %v5077_v50 = vld [vmem:[%s6615_s2 + $0x4e0] sm:$0xff]  }
 0x275   : > { %4560 = vmatpush3.bf16.msra.mxu0 %v5056_v28 }
 0x276   : > { %4500 = vmatpush3.bf16.msra.mxu1 %v5034_v57  ;;  %4561 = vmatprep.subr.bf16.mxu0 %v5059_v13 }
 0x277   : > { %4501 = vmatprep.subr.bf16.mxu1 %v5035_v33 }
 0x279   : > { %4562 = vmatpush3.bf16.msra.mxu0 %v5060_v5 }
 0x27a   : > { %4502 = vmatpush3.bf16.msra.mxu1 %v5036_v30  ;;  %4563 = vmatprep.subr.bf16.mxu0 %v5063_v60  ;;  %v5079_v60 = vld [vmem:[%s6615_s2 + $0x4a0] sm:$0xff]  }
 0x27b   : > { %4503 = vmatprep.subr.bf16.mxu1 %v5037_v19 }
 0x27d   : > { %4564 = vmatpush3.bf16.msra.mxu0 %v5064_v43 }
 0x27e   : > { %4504 = vmatpush3.bf16.msra.mxu1 %v5038_v42  ;;  %4565 = vmatprep.subr.bf16.mxu0 %v5066_v58  ;;  %v5081_v42 = vld [vmem:[%s6615_s2 + $0x4d8] sm:$0xff]  }
 0x27f   : > { %4505 = vmatprep.subr.bf16.mxu1 %v5039_v32 }
 0x281   : > { %4566 = vmatpush3.bf16.msra.mxu0 %v5068_v35 }
 0x282   : > { %4506 = vmatpush3.bf16.msra.mxu1 %v5040_v36  ;;  %4567 = vmatprep.subr.bf16.mxu0 %v5070_v37 }
 0x283   : > { %4535 = vmatprep.subr.bf16.mxu1 %v5041_v44 }
 0x285   : > { %3542 = vmatmul.mubr.bf16.vlgmr.msra.gmra.mxu1 %v1238_v48  ;;  %4568 = vmatpush3.bf16.msra.mxu0 %v5072_v46  ;;  %v5085_v48 = vld [vmem:[%s6615_s2 + $0x4d0] sm:$0xff]  }
 0x286   : > { %4536 = vmatpush3.bf16.msra.mxu1 %v5042_v47  ;;  %3621 = vmatprep.mubr.bf16.mxu1 %v1243_v23 }
 0x287   : > { %4537 = vmatprep.subr.bf16.mxu1 %v5043_v51  ;;  %4569 = vmatprep.subr.bf16.mxu0 %v5074_v34 }
 0x289   : > { %4570 = vmatpush3.bf16.msra.mxu0 %v5076_v22 }
 0x28a   : > { %4538 = vmatpush3.bf16.msra.mxu1 %v5044_v61  ;;  %4571 = vmatprep.subr.bf16.mxu0 %v5078_v62 }
 0x28b   : > { %4539 = vmatprep.subr.bf16.mxu1 %v5045_v7  ;;  %v5084_v7 = vld [vmem:[%s6615_s2 + $0x538] sm:$0xff]  }
 0x28d   : > { %4572 = vmatpush3.bf16.msra.mxu0 %v5080_v11 }
 0x28e   : > { %4540 = vmatpush3.bf16.msra.mxu1 %v5046_v14  ;;  %4601 = vmatprep.subr.bf16.mxu0 %v5083_v0  ;;  %v5086_v0 = vld [vmem:[%s6615_s2 + $0x490] sm:$0xff]  }
 0x28f   : > { %4541 = vmatprep.subr.bf16.mxu1 %v5047_v1 }
 0x292   : > { %4542 = vmatpush3.bf16.msra.mxu1 %v5048_v2 }
 0x293   : > { %4543 = vmatprep.subr.bf16.mxu1 %v5049_v38  ;;  %v5087_v38 = vld [vmem:[%s6615_s2 + $0x570] sm:$0xff]  }
 0x296   : > { %4544 = vmatpush3.bf16.msra.mxu1 %v5050_v63  ;;  %v5089_v63 = vld [vmem:[%s6615_s2 + $0x4c8] sm:$0xff]  }
 0x297   : > { %4545 = vmatprep.subr.bf16.mxu1 %v5053_v3  ;;  %v5088_v3 = vld [vmem:[%s6615_s2 + $0x530] sm:$0xff]  }
 0x29a   : > { %4546 = vmatpush3.bf16.msra.mxu1 %v5054_v6  ;;  %v5090_v6 = vld [vmem:[%s6615_s2 + $0x488] sm:$0xff]  }
 0x29b   : > { %4547 = vmatprep.subr.bf16.mxu1 %v5057_v10  ;;  %v5091_v10 = vld [vmem:[%s6615_s2 + $0x568] sm:$0xff]  }
 0x29e   : > { %4548 = vmatpush3.bf16.msra.mxu1 %v5058_v54  ;;  %v5093_v54 = vld [vmem:[%s6615_s2 + $0x4c0] sm:$0xff]  }
 0x29f   : > { %4549 = vmatprep.subr.bf16.mxu1 %v5061_v55  ;;  %v5092_v55 = vld [vmem:[%s6615_s2 + $0x528] sm:$0xff]  }
 0x2a2   : > { %4550 = vmatpush3.bf16.msra.mxu1 %v5062_v59  ;;  %v5094_v59 = vld [vmem:[%s6615_s2 + $0x480] sm:$0xff]  }
 0x2a3   : > { %4579 = vmatprep.subr.bf16.mxu1 %v5065_v40 }
 0x2a5   : > { %3622 = vmatmul.mubr.bf16.vlgmr.msra.gmra.mxu1 %v1242_v15  ;;  %v5096_v15 = vld [vmem:[%s6615_s2 + $0x520] sm:$0xff]  }
 0x2a6   : > { %v4861_v18 = vpop.permute.xlu0 %4860  ;;  %v4856_v16 = vpop.permute.xlu1 %4855  ;;  %4580 = vmatpush3.bf16.msra.mxu1 %v5067_v12  ;;  %v5097_v12 = vld [vmem:[%s6615_s2 + $0x5f8] sm:$0xff]  }
 0x2a7   : > { %v4858_v56 = vunpack.i.h.bf16 %v4856_v16  ;;  %v4857_v39 = vunpack.i.l.bf16 %v4856_v16  ;;  %4581 = vmatprep.subr.bf16.mxu1 %v5069_v17  ;;  %v4863_v52 = vunpack.i.h.bf16 %v4861_v18  ;;  %v4862_v20 = vunpack.i.l.bf16 %v4861_v18  ;;  %v5098_v18 = vld [vmem:[%s6615_s2 + $0x558] sm:$0xff]  }
 0x2a8   : > { %v5099_v16 = vld [vmem:[%s6615_s2 + $0x5b8] sm:$0xff]  }
 0x2a9   : > { %v1135_v21 = vsel %vm1133_vm8, %v5861_v8, %v4858_v56  ;;  %v1155_v4 = vsel %vm1133_vm8, %v5864_v9, %v4857_v39  ;;  %v5101_v56 = vld [vmem:[%s6615_s2 + $0x5f0] sm:$0xff]  }
 0x2aa   : > { %v4871_v24 = vpop.permute.xlu0 %4870  ;;  %v4866_v25 = vpop.permute.xlu1 %4865  ;;  %4582 = vmatpush3.bf16.msra.mxu1 %v5071_v29  ;;  %v1138_v8 = vsel %vm1136_vm9, %v1135_v21, %v4863_v52  ;;  %v1157_v9 = vsel %vm1136_vm9, %v1155_v4, %v4862_v20  ;;  %v5102_v52 = vld [vmem:[%s6615_s2 + $0x550] sm:$0xff]   ;;  %v5105_v21 = vld [vmem:[%s6615_s2 + $0x5e8] sm:$0xff]  }
 0x2ab   : > { %v4868_v49 = vunpack.i.h.bf16 %v4866_v25  ;;  %v4867_v27 = vunpack.i.l.bf16 %v4866_v25  ;;  %4583 = vmatprep.subr.bf16.mxu1 %v5073_v53  ;;  %v4873_v28 = vunpack.i.h.bf16 %v4871_v24  ;;  %v4872_v57 = vunpack.i.l.bf16 %v4871_v24  ;;  %v5100_v53 = vld [vmem:[%s6615_s2 + $0x518] sm:$0xff]   ;;  %v5103_v20 = vld [vmem:[%s6615_s2 + $0x5b0] sm:$0xff]   ;;  %v5106_v24 = vld [vmem:[%s6615_s2 + $0x548] sm:$0xff]  }
 0x2ac   : > { %v5104_v4 = vld [vmem:[%s6615_s2 + $0x510] sm:$0xff]   ;;  %v5107_v25 = vld [vmem:[%s6615_s2 + $0x5a8] sm:$0xff]  }
 0x2ad   : > { %v1141_v13 = vsel %vm1139_vm10, %v1138_v8, %v4868_v49  ;;  %v1159_v33 = vsel %vm1139_vm10, %v1157_v9, %v4867_v27  ;;  %v5108_v49 = vld [vmem:[%s6615_s2 + $0x508] sm:$0xff]   ;;  %v5110_v27 = vld [vmem:[%s6615_s2 + $0x540] sm:$0xff]   ;;  %v5114_v9 = vld [vmem:[%s6615_s2 + $0x598] sm:$0xff]  }
 0x2ae   : > { %v4881_v5 = vpop.permute.xlu0 %4880  ;;  %v4876_v30 = vpop.permute.xlu1 %4875  ;;  %4584 = vmatpush3.bf16.msra.mxu1 %v5075_v26  ;;  %v1144_v35 = vsel %vm1142_vm11, %v1141_v13, %v4873_v28  ;;  %v1161_v36 = vsel %vm1142_vm11, %v1159_v33, %v4872_v57  ;;  %v5109_v26 = vld [vmem:[%s6615_s2 + $0x5e0] sm:$0xff]   ;;  %v5113_v28 = vld [vmem:[%s6615_s2 + $0x5d8] sm:$0xff]  }
 0x2af   : > { %v4878_v19 = vunpack.i.h.bf16 %v4876_v30  ;;  %v4877_v43 = vunpack.i.l.bf16 %v4876_v30  ;;  %4585 = vmatprep.subr.bf16.mxu1 %v5077_v50  ;;  %v4883_v58 = vunpack.i.h.bf16 %v4881_v5  ;;  %v4882_v32 = vunpack.i.l.bf16 %v4881_v5  ;;  %v5111_v50 = vld [vmem:[%s6615_s2 + $0x5a0] sm:$0xff]   ;;  %v5115_v13 = vld [vmem:[%s6615_s2 + $0x678] sm:$0xff]   ;;  %v5117_v5 = vld [vmem:[%s6615_s2 + $0x5d0] sm:$0xff]  }
 0x2b0   : > { %v5112_v57 = vld [vmem:[%s6615_s2 + $0x500] sm:$0xff]   ;;  %v5116_v30 = vld [vmem:[%s6615_s2 + $0x638] sm:$0xff]  }
 0x2b1   : > { %v1147_v37 = vsel %vm1145_vm12, %v1144_v35, %v4878_v19  ;;  %v1163_v41 = vsel %vm1145_vm12, %v1161_v36, %v4877_v43  ;;  %v5118_v19 = vld [vmem:[%s6615_s2 + $0x590] sm:$0xff]   ;;  %v5122_v35 = vld [vmem:[%s6615_s2 + $0x588] sm:$0xff]  }
 0x2b2   : > { %v4886_v44 = vpop.permute.xlu1 %4885  ;;  %4586 = vmatpush3.bf16.msra.mxu1 %v5079_v60  ;;  %v1150_v51 = vsel %vm1148_vm13, %v1147_v37, %v4883_v58  ;;  %v1165_v34 = vsel %vm1148_vm13, %v1163_v41, %v4882_v32  ;;  %v5119_v43 = vld [vmem:[%s6615_s2 + $0x670] sm:$0xff]   ;;  %v5121_v58 = vld [vmem:[%s6615_s2 + $0x5c8] sm:$0xff]   ;;  %v5125_v37 = vld [vmem:[%s6615_s2 + $0x5c0] sm:$0xff]  }
 0x2b3   : > { %v4888_v46 = vunpack.i.h.bf16 %v4886_v44  ;;  %v4887_v47 = vunpack.i.l.bf16 %v4886_v44  ;;  %4587 = vmatprep.subr.bf16.mxu1 %v5081_v42  ;;  %v5120_v32 = vld [vmem:[%s6615_s2 + $0x630] sm:$0xff]   ;;  %v5123_v36 = vld [vmem:[%s6615_s2 + $0x668] sm:$0xff]   ;;  %v5126_v44 = vld [vmem:[%s6615_s2 + $0x580] sm:$0xff]  }
 0x2b4   : > { %v5124_v41 = vld [vmem:[%s6615_s2 + $0x628] sm:$0xff]  }
 0x2b5   : > { %v6241_v23 = vsel %vm1151_vm14, %v1150_v51, %v4888_v46  ;;  %v6244_v22 = vsel %vm1151_vm14, %v1165_v34, %v4887_v47  ;;  %v5129_v47 = vld [vmem:[%s6615_s2 + $0x6f8] sm:$0xff]   ;;  %v5128_v51 = vld [vmem:[%s6615_s2 + $0x620] sm:$0xff]  }
 0x2b6   : > { %v1245_v61 = vpack.c.bf16 %v6244_v22, %v6244_v22  ;;  %4588 = vmatpush3.bf16.msra.mxu1 %v5082_v45  ;;  %v1244_v62 = vpack.c.bf16 %v6241_v23, %v6241_v23  ;;  %v1201_v11 = vrot.slane %v6244_v22, 1  ;;  %v1205_v14 = vrot.slane %v6244_v22, 2  ;;  %v5127_v45 = vld [vmem:[%s6615_s2 + $0x660] sm:$0xff]  }
 0x2b7   : > { %4589 = vmatprep.subr.bf16.mxu1 %v5085_v48  ;;  %v1200_v40 = vrot.slane %v6241_v23, 1  ;;  %v1209_v17 = vrot.slane %v6244_v22, 3  ;;  %v1204_v8 = vrot.slane %v6241_v23, 2  ;;  %v1213_v33 = vrot.slane %v6244_v22, 4 }
 0x2b8   : > { %3661 = vmatprep.mubr.bf16.mxu0 %v1245_v61  ;;  %v1247_v1 = vpack.c.bf16 %v1201_v11, %v1201_v11  ;;  %v1249_v2 = vpack.c.bf16 %v1205_v14, %v1205_v14  ;;  %v1208_v46 = vrot.slane %v6241_v23, 3  ;;  %v1217_v34 = vrot.slane %v6244_v22, 5  ;;  %v5130_v61 = vld [vmem:[%s6615_s2 + $0x658] sm:$0xff]  }
 0x2b9   : > { %3662 = vmatmul.mubr.bf16.vlgmr.msra.gmra.mxu0 %v1244_v62  ;;  %v1246_v29 = vpack.c.bf16 %v1200_v40, %v1200_v40  ;;  %v1251_v39 = vpack.c.bf16 %v1209_v17, %v1209_v17  ;;  %v1248_v60 = vpack.c.bf16 %v1204_v8, %v1204_v8  ;;  %v1253_v42 = vpack.c.bf16 %v1213_v33, %v1213_v33  ;;  %v5131_v62 = vld [vmem:[%s6615_s2 + $0x6b8] sm:$0xff]   ;;  %v5140_v40 = vld [vmem:[%s6615_s2 + $0x608] sm:$0xff]  }
 0x2ba   : > { %4602 = vmatpush3.bf16.msra.mxu0 %v5084_v7  ;;  %3701 = vmatprep.mubr.bf16.mxu1 %v1247_v1  ;;  %v1250_v11 = vpack.c.bf16 %v1208_v46, %v1208_v46  ;;  %v5154_v8 = vld [vmem:[%s6615_s2 + $0x688] sm:$0xff]  }
 0x2bb   : > { %3741 = vmatprep.mubr.bf16.mxu0 %v1249_v2  ;;  %4590 = vmatpush3.bf16.msra.mxu1 %v5086_v0  ;;  %v5133_v0 = vld [vmem:[%s6615_s2 + $0x6f0] sm:$0xff]   ;;  %v1255_v2 = vpack.c.bf16 %v1217_v34, %v1217_v34  ;;  %v5156_v33 = vld [vmem:[%s6615_s2 + $0x728] sm:$0xff]  }
 0x2bc   : > { %4603 = vmatprep.subr.bf16.mxu0 %v5087_v38  ;;  %4591 = vmatprep.subr.bf16.mxu1 %v5089_v63  ;;  %v5132_v38 = vld [vmem:[%s6615_s2 + $0x618] sm:$0xff]   ;;  %v5134_v63 = vld [vmem:[%s6615_s2 + $0x650] sm:$0xff]  }
 0x2be   : > { %4604 = vmatpush3.bf16.msra.mxu0 %v5088_v3  ;;  %v5135_v3 = vld [vmem:[%s6615_s2 + $0x6b0] sm:$0xff]  }
 0x2bf   : > { %4592 = vmatpush3.bf16.msra.mxu1 %v5090_v6  ;;  %4605 = vmatprep.subr.bf16.mxu0 %v5091_v10  ;;  %v5137_v10 = vld [vmem:[%s6615_s2 + $0x6e8] sm:$0xff]  }
 0x2c0   : > { %4593 = vmatprep.subr.bf16.mxu1 %v5093_v54  ;;  %v5136_v54 = vld [vmem:[%s6615_s2 + $0x610] sm:$0xff]  }
 0x2c2   : > { %4606 = vmatpush3.bf16.msra.mxu0 %v5092_v55  ;;  %v5138_v55 = vld [vmem:[%s6615_s2 + $0x648] sm:$0xff]  }
 0x2c3   : > { %4594 = vmatpush3.bf16.msra.mxu1 %v5094_v59  ;;  %4607 = vmatprep.subr.bf16.mxu0 %v5095_v31  ;;  %v5139_v59 = vld [vmem:[%s6615_s2 + $0x6a8] sm:$0xff]   ;;  %v5141_v31 = vld [vmem:[%s6615_s2 + $0x6e0] sm:$0xff]  }
 0x2c4   : > { %4623 = vmatprep.subr.bf16.mxu1 %v5097_v12  ;;  %v5142_v12 = vld [vmem:[%s6615_s2 + $0x640] sm:$0xff]  }
 0x2c6   : > { %4608 = vmatpush3.bf16.msra.mxu0 %v5096_v15  ;;  %3702 = vmatmul.mubr.bf16.vlgmr.msra.gmra.mxu1 %v1246_v29  ;;  %v5143_v15 = vld [vmem:[%s6615_s2 + $0x6a0] sm:$0xff]  }
 0x2c7   : > { %4609 = vmatprep.subr.bf16.mxu0 %v5098_v18  ;;  %4624 = vmatpush3.bf16.msra.mxu1 %v5099_v16  ;;  %v5145_v18 = vld [vmem:[%s6615_s2 + $0x6d8] sm:$0xff]   ;;  %v5144_v29 = vld [vmem:[%s6615_s2 + $0x600] sm:$0xff]  }
 0x2c8   : > { %3781 = vmatprep.mubr.bf16.mxu1 %v1251_v39  ;;  %4625 = vmatprep.subr.bf16.mxu1 %v5101_v56  ;;  %v1212_v39 = vrot.slane %v6241_v23, 4 }
 0x2ca   : > { %4610 = vmatpush3.bf16.msra.mxu0 %v5100_v53  ;;  %v5146_v53 = vld [vmem:[%s6615_s2 + $0x698] sm:$0xff]  }
 0x2cb   : > { %4611 = vmatprep.subr.bf16.mxu0 %v5102_v52  ;;  %4626 = vmatpush3.bf16.msra.mxu1 %v5103_v20  ;;  %v5147_v52 = vld [vmem:[%s6615_s2 + $0x778] sm:$0xff]  }
 0x2cc   : > { %4627 = vmatprep.subr.bf16.mxu1 %v5105_v21  ;;  %v1221_v21 = vrot.slane %v6244_v22, 6 }
 0x2ce   : > { %4612 = vmatpush3.bf16.msra.mxu0 %v5104_v4  ;;  %v5149_v4 = vld [vmem:[%s6615_s2 + $0x6d0] sm:$0xff]  }
 0x2cf   : > { %4613 = vmatprep.subr.bf16.mxu0 %v5106_v24  ;;  %4628 = vmatpush3.bf16.msra.mxu1 %v5107_v25  ;;  %v5148_v25 = vld [vmem:[%s6615_s2 + $0x738] sm:$0xff]  }
 0x2d0   : > { %4629 = vmatprep.subr.bf16.mxu1 %v5109_v26  ;;  %v1252_v26 = vpack.c.bf16 %v1212_v39, %v1212_v39  ;;  %v5183_v39 = vld [vmem:[%s6615_s2 + $0x7c0] sm:$0xff]  }
 0x2d2   : > { %4614 = vmatpush3.bf16.msra.mxu0 %v5108_v49  ;;  %v5150_v49 = vld [vmem:[%s6615_s2 + $0x690] sm:$0xff]  }
 0x2d3   : > { %4615 = vmatprep.subr.bf16.mxu0 %v5110_v27  ;;  %4630 = vmatpush3.bf16.msra.mxu1 %v5111_v50  ;;  %v5151_v27 = vld [vmem:[%s6615_s2 + $0x770] sm:$0xff]   ;;  %v1257_v50 = vpack.c.bf16 %v1221_v21, %v1221_v21 }
 0x2d4   : > { %4631 = vmatprep.subr.bf16.mxu1 %v5113_v28  ;;  %v5153_v28 = vld [vmem:[%s6615_s2 + $0x6c8] sm:$0xff]  }
 0x2d6   : > { %4616 = vmatpush3.bf16.msra.mxu0 %v5112_v57  ;;  %v5152_v57 = vld [vmem:[%s6615_s2 + $0x730] sm:$0xff]  }
 0x2d7   : > { %4632 = vmatpush3.bf16.msra.mxu1 %v5114_v9  ;;  %4645 = vmatprep.subr.bf16.mxu0 %v5115_v13  ;;  %v5155_v9 = vld [vmem:[%s6615_s2 + $0x768] sm:$0xff]   ;;  %v5157_v13 = vld [vmem:[%s6615_s2 + $0x6c0] sm:$0xff]  }
 0x2d8   : > { %4633 = vmatprep.subr.bf16.mxu1 %v5117_v5  ;;  %v5158_v5 = vld [vmem:[%s6615_s2 + $0x680] sm:$0xff]  }
 0x2d9   : > { %3742 = vmatmul.mubr.bf16.vlgmr.msra.gmra.mxu0 %v1248_v60  ;;  %v1216_v60 = vrot.slane %v6241_v23, 5 }
 0x2da   : > { %4646 = vmatpush3.bf16.msra.mxu0 %v5116_v30  ;;  %3821 = vmatprep.mubr.bf16.mxu0 %v1253_v42  ;;  %v5159_v30 = vld [vmem:[%s6615_s2 + $0x760] sm:$0xff]   ;;  %v1225_v42 = vrot.slane %v6244_v22, 7  ;;  %v5165_v22 = vld [vmem:[%s6615_s2 + $0x7f0] sm:$0xff]  }
 0x2db   : > { %4634 = vmatpush3.bf16.msra.mxu1 %v5118_v19  ;;  %4647 = vmatprep.subr.bf16.mxu0 %v5119_v43  ;;  %v5161_v19 = vld [vmem:[%s6615_s2 + $0x7f8] sm:$0xff]   ;;  %v5160_v43 = vld [vmem:[%s6615_s2 + $0x720] sm:$0xff]  }
 0x2dc   : > { %4635 = vmatprep.subr.bf16.mxu1 %v5121_v58  ;;  %v5162_v58 = vld [vmem:[%s6615_s2 + $0x758] sm:$0xff]  }
 0x2de   : > { %4648 = vmatpush3.bf16.msra.mxu0 %v5120_v32  ;;  %v5163_v32 = vld [vmem:[%s6615_s2 + $0x7b8] sm:$0xff]  }
 0x2df   : > { %4636 = vmatpush3.bf16.msra.mxu1 %v5122_v35  ;;  %4649 = vmatprep.subr.bf16.mxu0 %v5123_v36  ;;  %v1772_v35 = vld [vmem:[%s6616_s3] sm:$0x1] }
 0x2e0   : > { %4637 = vmatprep.subr.bf16.mxu1 %v5125_v37  ;;  %v1254_v37 = vpack.c.bf16 %v1216_v60, %v1216_v60 }
 0x2e1   : > { %v4397_v48 = vpop.f32.mrf.mxu1 }
 0x2e2   : > { %4650 = vmatpush3.bf16.msra.mxu0 %v5124_v41  ;;  %v1259_v41 = vpack.c.bf16 %v1225_v42, %v1225_v42 }
 0x2e3   : > { %4638 = vmatpush3.bf16.msra.mxu1 %v5126_v44  ;;  %4651 = vmatprep.subr.bf16.mxu0 %v5127_v45  ;;  %v4398_v7 = vpop.f32.mrf.mxu1  ;;  %v5164_v45 = vld [vmem:[%s6615_s2 + $0x718] sm:$0xff]  }
 0x2e4   : > { %4667 = vmatprep.subr.bf16.mxu1 %v5129_v47  ;;  %v6399_v14 = vadd.f32 %v4398_v7, %v4397_v48  ;;  %v5166_v48 = vld [vmem:[%s6615_s2 + $0x750] sm:$0xff]  }
 0x2e5   : > { %v4400_v1 = vpop.f32.mrf.mxu1 }
 0x2e6   : > { %4652 = vmatpush3.bf16.msra.mxu0 %v5128_v51  ;;  %3782 = vmatmul.mubr.bf16.vlgmr.msra.gmra.mxu1 %v1250_v11  ;;  %v3344_v46 = vadd.f32 %v6399_v14, %v1772_v35  ;;  %v5167_v51 = vld [vmem:[%s6615_s2 + $0x7b0] sm:$0xff]   ;;  %v5170_v14 = vld [vmem:[%s6615_s2 + $0x748] sm:$0xff]  }
 0x2e7   : > { %4653 = vmatprep.subr.bf16.mxu0 %v5130_v61  ;;  %4668 = vmatpush3.bf16.msra.mxu1 %v5131_v62  ;;  %v4401_v6 = vpop.f32.mrf.mxu1  ;;  %v5169_v61 = vld [vmem:[%s6615_s2 + $0x7e8] sm:$0xff]   ;;  %v5168_v11 = vld [vmem:[%s6615_s2 + $0x710] sm:$0xff]  }
 0x2e8   : > { %3861 = vmatprep.mubr.bf16.mxu1 %v1255_v2  ;;  %4669 = vmatprep.subr.bf16.mxu1 %v5133_v0  ;;  %v5171_v0 = vld [vmem:[%s6615_s2 + $0x7a8] sm:$0xff]   ;;  %v5173_v2 = vld [vmem:[%s6615_s2 + $0x7e0] sm:$0xff]  }
 0x2ea   : > { %4654 = vmatpush3.bf16.msra.mxu0 %v5132_v38  ;;  %v5172_v38 = vld [vmem:[%s6615_s2 + $0x708] sm:$0xff]  }
 0x2eb   : > { %4655 = vmatprep.subr.bf16.mxu0 %v5134_v63  ;;  %4670 = vmatpush3.bf16.msra.mxu1 %v5135_v3  ;;  %v5174_v63 = vld [vmem:[%s6615_s2 + $0x740] sm:$0xff]  }
 0x2ec   : > { %4671 = vmatprep.subr.bf16.mxu1 %v5137_v10  ;;  %v5175_v3 = vld [vmem:[%s6615_s2 + $0x7a0] sm:$0xff]   ;;  %v5177_v10 = vld [vmem:[%s6615_s2 + $0x7d8] sm:$0xff]  }
 0x2ee   : > { %4656 = vmatpush3.bf16.msra.mxu0 %v5136_v54 }
 0x2ef   : > { %4657 = vmatprep.subr.bf16.mxu0 %v5138_v55  ;;  %4672 = vmatpush3.bf16.msra.mxu1 %v5139_v59  ;;  %v5176_v55 = vld [vmem:[%s6615_s2 + $0x700] sm:$0xff]  }
 0x2f0   : > { %v4441_v17 = vpop.f32.mrf.mxu0  ;;  %4673 = vmatprep.subr.bf16.mxu1 %v5141_v31  ;;  %v1220_v31 = vrot.slane %v6241_v23, 6 }
 0x2f2   : > { %v4442_v16 = vpop.f32.mrf.mxu0  ;;  %4658 = vmatpush3.bf16.msra.mxu0 %v5140_v40  ;;  %v5178_v40 = vld [vmem:[%s6615_s2 + $0x798] sm:$0xff]  }
 0x2f3   : > { %v6443_v56 = vadd.f32 %v4442_v16, %v4441_v17  ;;  %4659 = vmatprep.subr.bf16.mxu0 %v5142_v12  ;;  %4674 = vmatpush3.bf16.msra.mxu1 %v5143_v15  ;;  %v5179_v15 = vld [vmem:[%s6615_s2 + $0x7d0] sm:$0xff]  }
 0x2f4   : > { %v4444_v20 = vpop.f32.mrf.mxu0  ;;  %4675 = vmatprep.subr.bf16.mxu1 %v5145_v18  ;;  %v1256_v18 = vpack.c.bf16 %v1220_v31, %v1220_v31  ;;  %v5180_v16 = vld [vmem:[%s6615_s2 + $0x790] sm:$0xff]  }
 0x2f6   : > { %v4445_v24 = vpop.f32.mrf.mxu0  ;;  %4660 = vmatpush3.bf16.msra.mxu0 %v5144_v29  ;;  %v5181_v29 = vld [vmem:[%s6615_s2 + $0x7c8] sm:$0xff]  }
 0x2f7   : > { %4676 = vmatpush3.bf16.msra.mxu1 %v5146_v53  ;;  %4689 = vmatprep.subr.bf16.mxu0 %v5147_v52  ;;  %v5184_v53 = vld [vmem:[%s6615_s2 + $0x780] sm:$0xff]   ;;  %v1224_v52 = vrot.slane %v6241_v23, 7 }
 0x2f8   : > { %4677 = vmatprep.subr.bf16.mxu1 %v5149_v4 }
 0x2f9   : > { %3822 = vmatmul.mubr.bf16.vlgmr.msra.gmra.mxu0 %v1252_v26  ;;  %v1258_v20 = vpack.c.bf16 %v1224_v52, %v1224_v52 }
 0x2fa   : > { %4690 = vmatpush3.bf16.msra.mxu0 %v5148_v25  ;;  %3901 = vmatprep.mubr.bf16.mxu0 %v1257_v50 }
 0x2fb   : > { %4678 = vmatpush3.bf16.msra.mxu1 %v5150_v49  ;;  %4691 = vmatprep.subr.bf16.mxu0 %v5151_v27 }
 0x2fc   : > { %4679 = vmatprep.subr.bf16.mxu1 %v5153_v28 }
 0x2fe   : > { %4692 = vmatpush3.bf16.msra.mxu0 %v5152_v57 }
 0x2ff   : > { %4680 = vmatpush3.bf16.msra.mxu1 %v5154_v8  ;;  %4693 = vmatprep.subr.bf16.mxu0 %v5155_v9 }
 0x300   : > { %4681 = vmatprep.subr.bf16.mxu1 %v5157_v13 }
 0x302   : > { %4694 = vmatpush3.bf16.msra.mxu0 %v5156_v33 }
 0x303   : > { %4682 = vmatpush3.bf16.msra.mxu1 %v5158_v5  ;;  %4695 = vmatprep.subr.bf16.mxu0 %v5159_v30 }
 0x304   : > { %v4419_v36 = vpop.f32.mrf.mxu1  ;;  %4711 = vmatprep.subr.bf16.mxu1 %v5161_v19 }
 0x306   : > { %4696 = vmatpush3.bf16.msra.mxu0 %v5160_v43  ;;  %3862 = vmatmul.mubr.bf16.vlgmr.msra.gmra.mxu1 %v1254_v37  ;;  %v4420_v44 = vpop.f32.mrf.mxu1 }
 0x307   : > { %4697 = vmatprep.subr.bf16.mxu0 %v5162_v58  ;;  %4712 = vmatpush3.bf16.msra.mxu1 %v5163_v32  ;;  %v4421_v47 = vadd.f32 %v4420_v44, %v4419_v36 }
 0x308   : > { %3941 = vmatprep.mubr.bf16.mxu1 %v1259_v41  ;;  %v4422_v34 = vpop.f32.mrf.mxu1  ;;  %4713 = vmatprep.subr.bf16.mxu1 %v5165_v22 }
 0x309   : > { %v3384_v62 = vadd.f32 %v4421_v47, %v3344_v46 }
 0x30a   : > { %4698 = vmatpush3.bf16.msra.mxu0 %v5164_v45  ;;  %v4423_v7 = vpop.f32.mrf.mxu1 }
 0x30b   : > { %4699 = vmatprep.subr.bf16.mxu0 %v5166_v48  ;;  %4714 = vmatpush3.bf16.msra.mxu1 %v5167_v51  ;;  %v3424_v1 = vadd.f32 %v6443_v56, %v3384_v62  ;;  %v5182_v56 = vld [vmem:[%s6615_s2 + $0x788] sm:$0xff]  }
 0x30c   : > { %4715 = vmatprep.subr.bf16.mxu1 %v5169_v61 }
 0x30e   : > { %4700 = vmatpush3.bf16.msra.mxu0 %v5168_v11 }
 0x30f   : > { %4701 = vmatprep.subr.bf16.mxu0 %v5170_v14  ;;  %4716 = vmatpush3.bf16.msra.mxu1 %v5171_v0 }
 0x310   : > { %v4485_v6 = vpop.f32.mrf.mxu0  ;;  %4717 = vmatprep.subr.bf16.mxu1 %v5173_v2 }
 0x312   : > { %v4486_v54 = vpop.f32.mrf.mxu0  ;;  %4702 = vmatpush3.bf16.msra.mxu0 %v5172_v38 }
 0x313   : > { %v4487_v59 = vadd.f32 %v4486_v54, %v4485_v6  ;;  %4703 = vmatprep.subr.bf16.mxu0 %v5174_v63  ;;  %4718 = vmatpush3.bf16.msra.mxu1 %v5175_v3 }
 0x314   : > { %v4488_v12 = vpop.f32.mrf.mxu0  ;;  %4719 = vmatprep.subr.bf16.mxu1 %v5177_v10 }
 0x316   : > { %v4489_v17 = vpop.f32.mrf.mxu0  ;;  %4704 = vmatpush3.bf16.msra.mxu0 %v5176_v55 }
 0x317   : > { %4720 = vmatpush3.bf16.msra.mxu1 %v5178_v40 }
 0x318   : > { %4721 = vmatprep.subr.bf16.mxu1 %v5179_v15 }
 0x319   : > { %3902 = vmatmul.mubr.bf16.vlgmr.msra.gmra.mxu0 %v1256_v18 }
 0x31b   : > { %4722 = vmatpush3.bf16.msra.mxu1 %v5180_v16 }
 0x31c   : > { %4723 = vmatprep.subr.bf16.mxu1 %v5181_v29 }
 0x31f   : > { %4724 = vmatpush3.bf16.msra.mxu1 %v5182_v56 }
 0x320   : > { %4725 = vmatprep.subr.bf16.mxu1 %v5183_v39 }
 0x323   : > { %4726 = vmatpush3.bf16.msra.mxu1 %v5184_v53 }
 0x325   : > { %v4463_v21 = vpop.f32.mrf.mxu1 }
 0x326   : > { %3942 = vmatmul.mubr.bf16.vlgmr.msra.gmra.mxu1 %v1258_v20 }
 0x327   : > { %v4464_v4 = vpop.f32.mrf.mxu1 }
 0x328   : > { %v4465_v24 = vadd.f32 %v4464_v4, %v4463_v21 }
 0x329   : > { %v4466_v25 = vpop.f32.mrf.mxu1 }
 0x32a   : > { %v3464_v26 = vadd.f32 %v4465_v24, %v3424_v1 }
 0x32b   : > { %v4467_v49 = vpop.f32.mrf.mxu1 }
 0x32c   : > { %v3504_v27 = vadd.f32 %v4487_v59, %v3464_v26 }
 0x330   : > { %v4529_v50 = vpop.f32.mrf.mxu0 }
 0x332   : > { %v4530_v28 = vpop.f32.mrf.mxu0 }
 0x333   : > { %v4531_v57 = vadd.f32 %v4530_v28, %v4529_v50 }
 0x334   : > { %v4532_v8 = vpop.f32.mrf.mxu0 }
 0x336   : > { %v4533_v9 = vpop.f32.mrf.mxu0 }
 0x345   : > { %v4507_v13 = vpop.f32.mrf.mxu1 }
 0x347   : > { %v4508_v33 = vpop.f32.mrf.mxu1 }
 0x348   : > { %v4509_v5 = vadd.f32 %v4508_v33, %v4507_v13 }
 0x349   : > { %v4510_v30 = vpop.f32.mrf.mxu1 }
 0x34a   : > { %v3544_v23 = vadd.f32 %v4509_v5, %v3504_v27 }
 0x34b   : > { %v4511_v60 = vpop.f32.mrf.mxu1 }
 0x34c   : > { %v3584_v19 = vadd.f32 %v4531_v57, %v3544_v23 }
 0x365   : > { %v4551_v43 = vpop.f32.mrf.mxu1 }
 0x367   : > { %v4552_v42 = vpop.f32.mrf.mxu1 }
 0x368   : > { %v4553_v58 = vadd.f32 %v4552_v42, %v4551_v43 }
 0x369   : > { %v4554_v32 = vpop.f32.mrf.mxu1 }
 0x36a   : > { %v3624_v35 = vadd.f32 %v4553_v58, %v3584_v19 }
 0x36b   : > { %v4555_v36 = vpop.f32.mrf.mxu1 }
 0x379   : > { %v4573_v37 = vpop.f32.mrf.mxu0 }
 0x37b   : > { %v4574_v22 = vpop.f32.mrf.mxu0 }
 0x37c   : > { %v4575_v41 = vadd.f32 %v4574_v22, %v4573_v37 }
 0x37d   : > { %v4576_v44 = vpop.f32.mrf.mxu0 }
 0x37e   : > { %v3664_v45 = vadd.f32 %v4575_v41, %v3624_v35 }
 0x37f   : > { %v4577_v46 = vpop.f32.mrf.mxu0 }
 0x386   : > { %v4595_v47 = vpop.f32.mrf.mxu1 }
 0x388   : > { %v4596_v48 = vpop.f32.mrf.mxu1 }
 0x389   : > { %v4597_v51 = vadd.f32 %v4596_v48, %v4595_v47 }
 0x38a   : > { %v4598_v34 = vpop.f32.mrf.mxu1 }
 0x38b   : > { %v3704_v61 = vadd.f32 %v4597_v51, %v3664_v45 }
 0x38c   : > { %v4599_v62 = vpop.f32.mrf.mxu1 }
 0x399   : > { %v4617_v7 = vpop.f32.mrf.mxu0 }
 0x39b   : > { %v4618_v11 = vpop.f32.mrf.mxu0 }
 0x39c   : > { %v4619_v14 = vadd.f32 %v4618_v11, %v4617_v7 }
 0x39d   : > { %v4620_v0 = vpop.f32.mrf.mxu0 }
 0x39e   : > { %v3744_v1 = vadd.f32 %v4619_v14, %v3704_v61 }
 0x39f   : > { %v4621_v2 = vpop.f32.mrf.mxu0 }
 0x3a6   : > { %v4639_v38 = vpop.f32.mrf.mxu1 }
 0x3a8   : > { %v4640_v63 = vpop.f32.mrf.mxu1 }
 0x3a9   : > { %v4641_v29 = vadd.f32 %v4640_v63, %v4639_v38 }
 0x3aa   : > { %v4642_v3 = vpop.f32.mrf.mxu1 }
 0x3ab   : > { %v3784_v53 = vadd.f32 %v4641_v29, %v3744_v1 }
 0x3ac   : > { %v4643_v6 = vpop.f32.mrf.mxu1 }
 0x3b9   : > { %v4661_v10 = vpop.f32.mrf.mxu0 }
 0x3bb   : > { %v4662_v54 = vpop.f32.mrf.mxu0 }
 0x3bc   : > { %v4663_v39 = vadd.f32 %v4662_v54, %v4661_v10 }
 0x3bd   : > { %v4664_v55 = vpop.f32.mrf.mxu0 }
 0x3be   : > { %v3824_v20 = vadd.f32 %v4663_v39, %v3784_v53 }
 0x3bf   : > { %v4665_v59 = vpop.f32.mrf.mxu0 }
 0x3c6   : > { %v4683_v31 = vpop.f32.mrf.mxu1 }
 0x3c8   : > { %v4684_v40 = vpop.f32.mrf.mxu1 }
 0x3c9   : > { %v4685_v52 = vadd.f32 %v4684_v40, %v4683_v31 }
 0x3ca   : > { %v4686_v12 = vpop.f32.mrf.mxu1 }
 0x3cb   : > { %v3864_v24 = vadd.f32 %v4685_v52, %v3824_v20 }
 0x3cc   : > { %v4687_v15 = vpop.f32.mrf.mxu1 }
 0x3d9   : > { %v4705_v17 = vpop.f32.mrf.mxu0 }
 0x3db   : > { %v4706_v18 = vpop.f32.mrf.mxu0 }
 0x3dc   : > { %v4707_v21 = vadd.f32 %v4706_v18, %v4705_v17 }
 0x3dd   : > { %v4708_v16 = vpop.f32.mrf.mxu0 }
 0x3de   : > { %v3904_v26 = vadd.f32 %v4707_v21, %v3864_v24 }
 0x3df   : > { %v4709_v56 = vpop.f32.mrf.mxu0 }
 0x3e6   : > { %v4727_v4 = vpop.f32.mrf.mxu1 }
 0x3e8   : > { %v4728_v25 = vpop.f32.mrf.mxu1 }
 0x3e9   : > { %v4729_v49 = vadd.f32 %v4728_v25, %v4727_v4 }
 0x3ea   : > { %v4730_v27 = vpop.f32.mrf.mxu1 }
 0x3eb   : > { %v3944_v50 = vadd.f32 %v4729_v49, %v3904_v26 }
 0x3ec   : > { %v4731_v28 = vpop.f32.mrf.mxu1 }
 0x3ed   : > { %3950 = vst.msk [vmem:[%s189_s14] sm:$0x1] %vm3949_vm15, %v3944_v50 }
 0x3ee   : > { %5198 = shalt.err (!%p5195_p3)
}
 0x3ef   : > { %s5199_s13 = scalar_lea.hbm %s6578_s5, 16  ;;  %s5203_s6 = scalar_lea.hbm %s6617_s4, 32 }
 0x3f0   : > { %p5200_p4 = scmp.ne.s32.totalorder %s6578_s5, %s5199_s13  ;;  %p5204_p9 = scmp.lt.s32.totalorder %s6578_s5, %s6617_s4 }
 0x3f1   : > { %p5205_p10 = scmp.lt.s32.totalorder %s5203_s6, %s5199_s13 }
 0x3f2   : > { %p5201_p7 = pnand %p5200_p4, %p5318_p5 }
 0x3f3   : > { %p5206_p11 = por %p5205_p10, %p5204_p9 }
 0x3f4   : > { %p5202_p8 = pneg %p5201_p7 }
 0x3f6   : > { %p5207_p12 = pnand %p5206_p11, %p5202_p8 }
 0x3f8   : > { %5210 = shalt.err (!%p5207_p12)
}
 0x3f9   : > { %4733 = dma.vmem_to_hbm [thread:$0]  (%p5318_p5), %s3965_s20, 16, %s6578_s5, %s3952_s23  }
 0x3fa PF: > { %p4739_p13 = scmp.ge.s32.totalorder %s5245_s18, 2  ;;  %s3976_s9 = sand.u32 1, %s5233_s15  }
 0x3fb   : > { %s3977_s12 = scalar_lea.sflag [#allocation3], %s3976_s9 }
 0x3fc   : > { %p4736_p0 = pnand %p4739_p13, %p5322_p6 }
 0x3fe   : > { %p4737_p1 = pneg %p4736_p0 }
 0x400   : > { %5228 = dma.done.wait (%p4737_p1), %s3977_s12, 16  }
 0x401   : > { %5230 = vsyncadd (%p4737_p1), %s3977_s12, 4294967280  ;;  %p14_p2 = scmp.ge.s32.totalorder %s5305_s21, 4   ;;  %s6620_s15 = smov %s5237_s16 }
 0x402   : > { %s6621_s16 = smov %s5241_s17  ;;  %s6622_s17 = smov %s5316_s24 }
 0x403   : > { %s6623_s18 = smov %s5305_s21  ;;  %16 = sbr.rel (!%p14_p2) target bundleno = 3 (0x3), region = 71 }
 0x408   :  { %3981 = vsyncpa [#allocation3], 1 }
 0x409   :  { %3983 = vsyncpa [#allocation3 + $0x1], 1 }

</bundles_post_ra>
